<compile_context>
chip_gen: v6e
topology: v6e:2x2x1
jax: 0.10.0
libtpu: 0.0.40
codegen_flags: <defaults>
</compile_context>

<pallas_src>
import functools

import jax
import jax.numpy as jnp
from jax.experimental import pallas as pl
from jax.experimental.pallas import tpu as pltpu

EPS = 1e-5


# -----------------------------------------------------------------------------
# Wrapper-side weight folding (tiny one-off XLA work, all before phase 1).
# -----------------------------------------------------------------------------
def _fold_conv3x3_stacked(w_oihw, W):
    """(Cout, Cin, 3, 3) -> (3*W*Cin, W*Cout) tap-stacked block-banded matrix.

    Row-block kh (size W*Cin) holds tap kh, so that
        out[r] = concat([x[r-1], x[r], x[r+1]], axis=-1) @ B
    equals the pad=1 3x3 convolution of row r (horizontal zero padding folded
    into the band structure; vertical padding handled by zeroed shift rows).
    """
    w_hwio = jnp.transpose(w_oihw, (2, 3, 1, 0)).astype(jnp.float32)  # (3,3,Ci,Co)
    Cin, Cout = w_hwio.shape[2], w_hwio.shape[3]
    mats = []
    for kh in range(3):
        acc = jnp.zeros((W * Cin, W * Cout), jnp.float32)
        for kw in range(3):
            # band[u, w] = 1  iff  u == w + kw - 1   (valid horizontal taps)
            band = jnp.eye(W, k=1 - kw, dtype=jnp.float32)
            acc = acc + jnp.einsum("uw,ic->uiwc", band, w_hwio[kh, kw]).reshape(
                W * Cin, W * Cout)
        mats.append(acc)
    return jnp.concatenate(mats, axis=0)                      # (3*W*Cin, W*Cout)


def _fold_conv1x1(w_oihw, W):
    """(Cout, Cin, 1, 1) -> (W*Cin, W*Cout) block-diagonal matrix."""
    w2d = jnp.transpose(w_oihw[:, :, 0, 0], (1, 0)).astype(jnp.float32)  # (Ci, Co)
    blk = jnp.einsum("uw,ic->uiwc", jnp.eye(W, dtype=jnp.float32), w2d)
    return blk.reshape(W * w2d.shape[0], W * w2d.shape[1])


def _gamma_beta_rows(gamma, beta, W):
    """(C,),(C,) -> (2, W*C) lane-dense rows [gamma tiled; beta tiled]."""
    return jnp.stack([jnp.tile(gamma.astype(jnp.float32), W),
                      jnp.tile(beta.astype(jnp.float32), W)])


def _channel_fold_matrix(W, C):
    """(W*C, W*C) matrix R with R[u,v]=1 iff (u%C)==(v%C).

    tot(1,W*C) @ R sums the W copies of each channel and broadcasts the
    per-channel total back to every lane of that channel — keeps the BN
    scale/shift computation lane-dense inside the kernels.
    """
    lane_c = jnp.arange(W * C, dtype=jnp.int32) % C
    return (lane_c[:, None] == lane_c[None, :]).astype(jnp.float32)


# -----------------------------------------------------------------------------
# In-kernel helpers.
# -----------------------------------------------------------------------------
def _shifted_slab(x, H, out_dtype):
    """(R, C) -> (R, 3*C) slab [x[r-1], x[r], x[r+1]] for a tile of whole images.

    R must be a multiple of H and start at an image boundary; rows shifted
    across an image boundary (top/bottom pad rows) are zeroed via an iota mask.
    All shift/mask work is done in f32 (values are exact), the slab is cast to
    the MXU operand dtype at the end.
    """
    xf = x.astype(jnp.float32)
    R, C = xf.shape
    row = jax.lax.broadcasted_iota(jnp.int32, (R, 1), 0)
    zrow = jnp.zeros((1, C), jnp.float32)
    dn = jnp.concatenate([zrow, xf[:-1]], axis=0)          # dn[r] = x[r-1]
    up = jnp.concatenate([xf[1:], zrow], axis=0)           # up[r] = x[r+1]
    dn = jnp.where(row % H != 0, dn, 0.0)                  # zero top row of each image
    up = jnp.where(row % H != (H - 1), up, 0.0)            # zero bottom row of each image
    return jnp.concatenate([dn, xf, up], axis=1).astype(out_dtype)


def _lane_stats(y_f32):
    """(rows, W*C) f32 -> lane-dense (2, W*C) per-lane (sum, sum_sq)."""
    s = jnp.sum(y_f32, axis=0, keepdims=True)
    ss = jnp.sum(y_f32 * y_f32, axis=0, keepdims=True)
    return jnp.concatenate([s, ss], axis=0)


def _bn_scale_shift(stats_ref, gb_ref, rmat_ref, count):
    """Raw per-tile stats -> lane-dense (1, W*C) BN scale and shift (f32)."""
    tot = jnp.sum(stats_ref[...], axis=0)                  # (2, W*C) reduce over tiles
    per = jnp.dot(tot, rmat_ref[...], preferred_element_type=jnp.float32)
    mean = per[0:1, :] / count
    var = per[1:2, :] / count - mean * mean                # biased var (BN forward)
    gb = gb_ref[...]
    scale = gb[0:1, :] * jax.lax.rsqrt(var + EPS)
    shift = gb[1:2, :] - mean * scale
    return scale, shift


# -----------------------------------------------------------------------------
# Phase kernels.
# -----------------------------------------------------------------------------
def _phase1_kernel(has_downsample, H, compute_dtype):
    if has_downsample:
        def kernel(x_ref, w1_ref, wd_ref, y1_ref, yd_ref, st1_ref, std_ref):
            x = x_ref[...]
            slab = _shifted_slab(x, H, compute_dtype)
            y1 = jnp.dot(slab, w1_ref[...], preferred_element_type=jnp.float32)
            y1c = y1.astype(y1_ref.dtype)
            y1_ref[...] = y1c
            st1_ref[0] = _lane_stats(y1c.astype(jnp.float32))
            yd = jnp.dot(x, wd_ref[...], preferred_element_type=jnp.float32)
            ydc = yd.astype(yd_ref.dtype)
            yd_ref[...] = ydc
            std_ref[0] = _lane_stats(ydc.astype(jnp.float32))
    else:
        def kernel(x_ref, w1_ref, y1_ref, st1_ref):
            slab = _shifted_slab(x_ref[...], H, compute_dtype)
            y1 = jnp.dot(slab, w1_ref[...], preferred_element_type=jnp.float32)
            y1c = y1.astype(y1_ref.dtype)
            y1_ref[...] = y1c
            st1_ref[0] = _lane_stats(y1c.astype(jnp.float32))
    return kernel


def _phase2_kernel(H, count, compute_dtype):
    def kernel(y1_ref, st1_ref, gb1_ref, rmat_ref, w2_ref, y2_ref, st2_ref):
        scale, shift = _bn_scale_shift(st1_ref, gb1_ref, rmat_ref, count)
        z = jnp.maximum(y1_ref[...].astype(jnp.float32) * scale + shift, 0.0)
        slab = _shifted_slab(z, H, compute_dtype)
        y2 = jnp.dot(slab, w2_ref[...], preferred_element_type=jnp.float32)
        y2c = y2.astype(y2_ref.dtype)
        y2_ref[...] = y2c
        st2_ref[0] = _lane_stats(y2c.astype(jnp.float32))
    return kernel


def _phase3_kernel(has_downsample, count):
    if has_downsample:
        def kernel(y2_ref, yd_ref, st2_ref, std_ref, gb2_ref, gbd_ref, rmat_ref,
                   out_ref):
            s2, b2 = _bn_scale_shift(st2_ref, gb2_ref, rmat_ref, count)
            sd, bd = _bn_scale_shift(std_ref, gbd_ref, rmat_ref, count)
            a = y2_ref[...].astype(jnp.float32) * s2 + b2
            b = yd_ref[...].astype(jnp.float32) * sd + bd
            out_ref[...] = jnp.maximum(a + b, 0.0).astype(out_ref.dtype)
    else:
        def kernel(y2_ref, xres_ref, st2_ref, gb2_ref, rmat_ref, out_ref):
            s2, b2 = _bn_scale_shift(st2_ref, gb2_ref, rmat_ref, count)
            a = y2_ref[...].astype(jnp.float32) * s2 + b2
            out_ref[...] = jnp.maximum(a + xres_ref[...].astype(jnp.float32),
                                       0.0).astype(out_ref.dtype)
    return kernel


# -----------------------------------------------------------------------------
# Public wrapper.
# -----------------------------------------------------------------------------
def basic_block_forward(x_nchw, params, *, stride=1,
                        compute_dtype=jnp.bfloat16, max_rows_per_tile=256):
    """BasicBlock forward (train-mode BN). (N, Cin, H, W) f32 -> (N, Cout, H, W) f32."""
    assert stride == 1, "only stride=1 supported"   # TODO(synk): stride > 1
    N, Cin, H, W = x_nchw.shape
    Cout = params["w1"].shape[0]
    has_downsample = (stride != 1) or (Cin != Cout)
    WCi, WCo = W * Cin, W * Cout
    count = float(N * H * W)

    # Row tiles hold whole images: largest divisor of N with ipt*H <= cap.
    ipt = 1
    for d in range(1, N + 1):
        if N % d == 0 and d * H <= max_rows_per_tile:
            ipt = d
    R = ipt * H
    T = N // ipt                                            # grid steps

    # Lane-dense activation layout: (N*H, W*C), lane = w*C + c.
    x2d = jnp.transpose(x_nchw, (0, 2, 3, 1)).reshape(N * H, WCi).astype(jnp.float32)
    xc = x2d.astype(compute_dtype)

    # Folded conv weights (tap-stacked K = 3*W*Cin) and BN helper matrices.
    w1s = _fold_conv3x3_stacked(params["w1"], W).astype(compute_dtype)   # (3*WCi, WCo)
    w2s = _fold_conv3x3_stacked(params["w2"], W).astype(compute_dtype)   # (3*WCo, WCo)
    rmat = _channel_fold_matrix(W, Cout)                                  # (WCo, WCo)
    gb1 = _gamma_beta_rows(params["g1"], params["b1"], W)                 # (2, WCo)
    gb2 = _gamma_beta_rows(params["g2"], params["b2"], W)

    grid = (T,)
    cparams = pltpu.CompilerParams(dimension_semantics=("parallel",))

    def row_spec(width):
        return pl.BlockSpec((R, width), lambda t: (t, 0))

    def full_spec(arr):
        nd = arr.ndim
        return pl.BlockSpec(arr.shape, lambda t: (0,) * nd)

    stats_spec = pl.BlockSpec((1, 2, WCo), lambda t: (t, 0, 0))
    stats_shape = jax.ShapeDtypeStruct((T, 2, WCo), jnp.float32)          # lane-dense
    act_shape = jax.ShapeDtypeStruct((N * H, WCo), compute_dtype)

    # ---- phase 1: conv1 (+ 1x1 downsample conv) + lane-dense per-tile stats ---
    if has_downsample:
        wdf = _fold_conv1x1(params["wd"], W).astype(compute_dtype)        # (WCi, WCo)
        y1, yd, st1, std = pl.pallas_call(
            _phase1_kernel(True, H, compute_dtype),
            grid=grid,
            in_specs=[row_spec(WCi), full_spec(w1s), full_spec(wdf)],
            out_specs=[row_spec(WCo), row_spec(WCo), stats_spec, stats_spec],
            out_shape=[act_shape, act_shape, stats_shape, stats_shape],
            compiler_params=cparams,
        )(xc, w1s, wdf)
    else:
        y1, st1 = pl.pallas_call(
            _phase1_kernel(False, H, compute_dtype),
            grid=grid,
            in_specs=[row_spec(WCi), full_spec(w1s)],
            out_specs=[row_spec(WCo), stats_spec],
            out_shape=[act_shape, stats_shape],
            compiler_params=cparams,
        )(xc, w1s)

    # ---- phase 2: BN1 (in-kernel from raw stats) + ReLU + conv2 + stats -------
    y2, st2 = pl.pallas_call(
        _phase2_kernel(H, count, compute_dtype),
        grid=grid,
        in_specs=[row_spec(WCo), full_spec(st1), full_spec(gb1),
                  full_spec(rmat), full_spec(w2s)],
        out_specs=[row_spec(WCo), stats_spec],
        out_shape=[act_shape, stats_shape],
        compiler_params=cparams,
    )(y1, st1, gb1, rmat, w2s)

    # ---- phase 3: BN2 (+ BNd) in-kernel + residual add + ReLU -----------------
    out_sds = jax.ShapeDtypeStruct((N * H, WCo), jnp.float32)
    if has_downsample:
        gbd = _gamma_beta_rows(params["gd"], params["bd"], W)
        out2d = pl.pallas_call(
            _phase3_kernel(True, count),
            grid=grid,
            in_specs=[row_spec(WCo), row_spec(WCo), full_spec(st2), full_spec(std),
                      full_spec(gb2), full_spec(gbd), full_spec(rmat)],
            out_specs=row_spec(WCo),
            out_shape=out_sds,
            compiler_params=cparams,
        )(y2, yd, st2, std, gb2, gbd, rmat)
    else:
        out2d = pl.pallas_call(
            _phase3_kernel(False, count),
            grid=grid,
            in_specs=[row_spec(WCo), row_spec(WCi), full_spec(st2),
                      full_spec(gb2), full_spec(rmat)],
            out_specs=row_spec(WCo),
            out_shape=out_sds,
            compiler_params=cparams,
        )(y2, xc, st2, gb2, rmat)

    return jnp.transpose(out2d.reshape(N, H, W, Cout), (0, 3, 1, 2))      # NCHW


# -----------------------------------------------------------------------------
# Pure-JAX reference (training-mode BatchNorm).
# -----------------------------------------------------------------------------
def _reference(x, params, stride=1):
    Cin, Cout = x.shape[1], params["w1"].shape[0]

    def conv(x, w, stride, pad):
        return jax.lax.conv_general_dilated(
            x, w, (stride, stride), [(pad, pad), (pad, pad)],
            dimension_numbers=("NCHW", "OIHW", "NCHW"))

    def bn(y, g, b):
        mean = jnp.mean(y, axis=(0, 2, 3), keepdims=True)
        var = jnp.mean((y - mean) ** 2, axis=(0, 2, 3), keepdims=True)
        return ((y - mean) * jax.lax.rsqrt(var + EPS)
                * g[None, :, None, None] + b[None, :, None, None])

    out = jax.nn.relu(bn(conv(x, params["w1"], stride, 1), params["g1"], params["b1"]))
    out = bn(conv(out, params["w2"], 1, 1), params["g2"], params["b2"])
    if stride != 1 or Cin != Cout:
        ident = bn(conv(x, params["wd"], stride, 0), params["gd"], params["bd"])
    else:
        ident = x
    return jax.nn.relu(out + ident)


if __name__ == "__main__":
    key = jax.random.PRNGKey(0)

    def make_params(k, Cin, Cout, downsample):
        ks = jax.random.split(k, 3)
        p = {
            "w1": 0.1 * jax.random.normal(ks[0], (Cout, Cin, 3, 3), jnp.float32),
            "w2": 0.1 * jax.random.normal(ks[1], (Cout, Cout, 3, 3), jnp.float32),
            "g1": jnp.ones((Cout,), jnp.float32), "b1": jnp.zeros((Cout,), jnp.float32),
            "g2": jnp.ones((Cout,), jnp.float32), "b2": jnp.zeros((Cout,), jnp.float32),
        }
        if downsample:
            p["wd"] = 0.1 * jax.random.normal(ks[2], (Cout, Cin, 1, 1), jnp.float32)
            p["gd"] = jnp.ones((Cout,), jnp.float32)
            p["bd"] = jnp.zeros((Cout,), jnp.float32)
        return p

    N, H, W = 2, 16, 16
    k1, k2, k3 = jax.random.split(key, 3)

    # Case 1: channel-expanding block (1x1-conv downsample path), f32 compute.
    x1 = jax.random.normal(k1, (N, 4, H, W), jnp.float32)
    p1 = make_params(k2, 4, 8, True)
    fwd_f32 = jax.jit(functools.partial(basic_block_forward,
                                        compute_dtype=jnp.float32))
    out1 = jax.block_until_ready(fwd_f32(x1, p1))
    assert out1.shape == (N, 8, H, W), out1.shape
    ref1 = _reference(x1, p1)
    if not jnp.allclose(out1, ref1, atol=5e-4, rtol=5e-4):
        raise AssertionError(
            f"downsample case mismatch: max abs err = "
            f"{float(jnp.max(jnp.abs(out1 - ref1)))}")

    # Case 2: identity-skip block (Cin == Cout), f32 compute.
    x2 = jax.random.normal(k3, (N, 8, H, W), jnp.float32)
    p2 = make_params(jax.random.fold_in(key, 7), 8, 8, False)
    out2 = jax.block_until_ready(fwd_f32(x2, p2))
    ref2 = _reference(x2, p2)
    if not jnp.allclose(out2, ref2, atol=5e-4, rtol=5e-4):
        raise AssertionError(
            f"identity case mismatch: max abs err = "
            f"{float(jnp.max(jnp.abs(out2 - ref2)))}")

    # Case 3: default bf16 MXU operands / bf16 staged intermediates
    # (v6e/v7x fast path); stats, accumulation and BN math stay f32 in-kernel.
    fwd_bf16 = jax.jit(basic_block_forward)
    out3 = jax.block_until_ready(fwd_bf16(x1, p1))
    if not jnp.allclose(out3, ref1, atol=1e-1, rtol=1e-1):
        raise AssertionError(
            f"bf16 case mismatch: max abs err = "
            f"{float(jnp.max(jnp.abs(out3 - ref1)))}")

    print("KERNEL_OK")
</pallas_src>

<mosaic_0001>
module attributes {stable_mosaic.version = 11 : i64} {
  func.func @kernel(%arg0: i32, %arg1: memref<32x64xf32, #tpu.memory_space<vmem>>, %arg2: memref<192x128xf32, #tpu.memory_space<vmem>>, %arg3: memref<64x128xf32, #tpu.memory_space<vmem>>, %arg4: memref<32x128xf32, #tpu.memory_space<vmem>>, %arg5: memref<32x128xf32, #tpu.memory_space<vmem>>, %arg6: memref<1x2x128xf32, #tpu.memory_space<vmem>>, %arg7: memref<1x2x128xf32, #tpu.memory_space<vmem>>) attributes {dimension_semantics = [#tpu.dimension_semantics<parallel>], iteration_bounds = array<i64: 1>, scalar_prefetch = 0 : i64, scratch_operands = 0 : i64, tpu.core_type = #tpu.core_type<tc>, window_params = [{transform_indices = @transform_0, window_bounds = array<i64: 32, 64>}, {pipeline_mode = #tpu.pipeline_mode<synchronous>, transform_indices = @transform_1, window_bounds = array<i64: 192, 128>}, {pipeline_mode = #tpu.pipeline_mode<synchronous>, transform_indices = @transform_2, window_bounds = array<i64: 64, 128>}, {transform_indices = @transform_3, window_bounds = array<i64: 32, 128>}, {transform_indices = @transform_4, window_bounds = array<i64: 32, 128>}, {transform_indices = @transform_5, window_bounds = array<i64: 1, 2, 128>}, {transform_indices = @transform_6, window_bounds = array<i64: 1, 2, 128>}]} {
    %c0 = arith.constant 0 : index
    %c0_0 = arith.constant 0 : index
    %0 = vector.load %arg1[%c0, %c0_0] : memref<32x64xf32, #tpu.memory_space<vmem>>, vector<32x64xf32>
    %1 = tpu.iota {dimensions = array<i32: 0>} : vector<32x1xi32>
    %cst = arith.constant 0.000000e+00 : f32
    %2 = vector.broadcast %cst : f32 to vector<1x64xf32>
    %3 = vector.extract_strided_slice %0 {offsets = [0, 0], sizes = [31, 64], strides = [1, 1]} : vector<32x64xf32> to vector<31x64xf32>
    %4 = tpu.concatenate %2, %3 in 0 : vector<1x64xf32>, vector<31x64xf32> -> vector<32x64xf32>
    %5 = vector.extract_strided_slice %0 {offsets = [1, 0], sizes = [31, 64], strides = [1, 1]} : vector<32x64xf32> to vector<31x64xf32>
    %6 = tpu.concatenate %5, %2 in 0 : vector<31x64xf32>, vector<1x64xf32> -> vector<32x64xf32>
    %c16_i32 = arith.constant 16 : i32
    %c0_i32 = arith.constant 0 : i32
    %7 = arith.cmpi eq, %c16_i32, %c0_i32 : i32
    %c1_i32 = arith.constant 1 : i32
    %8 = arith.select %7, %c1_i32, %c16_i32 : i32
    %9 = vector.broadcast %8 : i32 to vector<32x1xi32>
    %10 = arith.remsi %1, %9 : vector<32x1xi32>
    %c0_i32_1 = arith.constant 0 : i32
    %11 = vector.broadcast %c0_i32_1 : i32 to vector<32x1xi32>
    %12 = arith.cmpi ne, %10, %11 : vector<32x1xi32>
    %c0_i32_2 = arith.constant 0 : i32
    %13 = vector.broadcast %c0_i32_2 : i32 to vector<32x1xi32>
    %14 = arith.cmpi slt, %10, %13 : vector<32x1xi32>
    %c0_i32_3 = arith.constant 0 : i32
    %15 = arith.cmpi slt, %8, %c0_i32_3 : i32
    %16 = vector.broadcast %15 : i1 to vector<32x1xi1>
    %17 = vector.broadcast %16 : vector<32x1xi1> to vector<32x1xi1>
    %18 = arith.xori %14, %17 : vector<32x1xi1>
    %19 = arith.andi %18, %12 : vector<32x1xi1>
    %20 = vector.broadcast %8 : i32 to vector<32x1xi32>
    %21 = arith.addi %10, %20 : vector<32x1xi32>
    %22 = arith.select %19, %21, %10 : vector<32x1xi1>, vector<32x1xi32>
    %c0_i32_4 = arith.constant 0 : i32
    %23 = vector.broadcast %c0_i32_4 : i32 to vector<32x1xi32>
    %24 = arith.cmpi ne, %22, %23 : vector<32x1xi32>
    %cst_5 = arith.constant 0.000000e+00 : f32
    %25 = vector.shape_cast %24 : vector<32x1xi1> to vector<32x1xi1>
    %26 = vector.broadcast %25 : vector<32x1xi1> to vector<32x64xi1>
    %27 = vector.broadcast %cst_5 : f32 to vector<32x64xf32>
    %28 = arith.select %26, %4, %27 : vector<32x64xi1>, vector<32x64xf32>
    %c16_i32_6 = arith.constant 16 : i32
    %c0_i32_7 = arith.constant 0 : i32
    %29 = arith.cmpi eq, %c16_i32_6, %c0_i32_7 : i32
    %c1_i32_8 = arith.constant 1 : i32
    %30 = arith.select %29, %c1_i32_8, %c16_i32_6 : i32
    %31 = vector.broadcast %30 : i32 to vector<32x1xi32>
    %32 = arith.remsi %1, %31 : vector<32x1xi32>
    %c0_i32_9 = arith.constant 0 : i32
    %33 = vector.broadcast %c0_i32_9 : i32 to vector<32x1xi32>
    %34 = arith.cmpi ne, %32, %33 : vector<32x1xi32>
    %c0_i32_10 = arith.constant 0 : i32
    %35 = vector.broadcast %c0_i32_10 : i32 to vector<32x1xi32>
    %36 = arith.cmpi slt, %32, %35 : vector<32x1xi32>
    %c0_i32_11 = arith.constant 0 : i32
    %37 = arith.cmpi slt, %30, %c0_i32_11 : i32
    %38 = vector.broadcast %37 : i1 to vector<32x1xi1>
    %39 = vector.broadcast %38 : vector<32x1xi1> to vector<32x1xi1>
    %40 = arith.xori %36, %39 : vector<32x1xi1>
    %41 = arith.andi %40, %34 : vector<32x1xi1>
    %42 = vector.broadcast %30 : i32 to vector<32x1xi32>
    %43 = arith.addi %32, %42 : vector<32x1xi32>
    %44 = arith.select %41, %43, %32 : vector<32x1xi1>, vector<32x1xi32>
    %c15_i32 = arith.constant 15 : i32
    %45 = vector.broadcast %c15_i32 : i32 to vector<32x1xi32>
    %46 = arith.cmpi ne, %44, %45 : vector<32x1xi32>
    %cst_12 = arith.constant 0.000000e+00 : f32
    %47 = vector.shape_cast %46 : vector<32x1xi1> to vector<32x1xi1>
    %48 = vector.broadcast %47 : vector<32x1xi1> to vector<32x64xi1>
    %49 = vector.broadcast %cst_12 : f32 to vector<32x64xf32>
    %50 = arith.select %48, %6, %49 : vector<32x64xi1>, vector<32x64xf32>
    %51 = tpu.concatenate %28, %0, %50 in 1 : vector<32x64xf32>, vector<32x64xf32>, vector<32x64xf32> -> vector<32x192xf32>
    %c0_13 = arith.constant 0 : index
    %c0_14 = arith.constant 0 : index
    %52 = vector.load %arg2[%c0_13, %c0_14] : memref<192x128xf32, #tpu.memory_space<vmem>>, vector<192x128xf32>
    %cst_15 = arith.constant dense<0.000000e+00> : vector<32x128xf32>
    %53 = tpu.matmul %51, %52, %cst_15 {dimension_numbers = #tpu.dot_dimension_numbers<[1], [0], [0], [1], [0, 0, 1, 1], [], []>} : vector<32x192xf32>, vector<192x128xf32>, vector<32x128xf32> -> vector<32x128xf32>
    %c0_16 = arith.constant 0 : index
    %c0_17 = arith.constant 0 : index
    %54 = vector.load %arg4[%c0_16, %c0_17] : memref<32x128xf32, #tpu.memory_space<vmem>>, vector<32x128xf32>
    tpu.vector_store %arg4[%c0_16, %c0_17], %53 {strides = array<i32>} : memref<32x128xf32, #tpu.memory_space<vmem>>, vector<32x128xf32>,
    %cst_18 = arith.constant dense<0.000000e+00> : vector<128xf32>
    %55 = vector.multi_reduction <add>, %53, %cst_18 [0] : vector<32x128xf32> to vector<128xf32>
    %56 = vector.shape_cast %55 : vector<128xf32> to vector<1x128xf32>
    %57 = arith.mulf %53, %53 : vector<32x128xf32>
    %cst_19 = arith.constant dense<0.000000e+00> : vector<128xf32>
    %58 = vector.multi_reduction <add>, %57, %cst_19 [0] : vector<32x128xf32> to vector<128xf32>
    %59 = vector.shape_cast %58 : vector<128xf32> to vector<1x128xf32>
    %60 = tpu.concatenate %56, %59 in 0 : vector<1x128xf32>, vector<1x128xf32> -> vector<2x128xf32>
    %c0_20 = arith.constant 0 : index
    %c0_21 = arith.constant 0 : index
    %c0_22 = arith.constant 0 : index
    %61 = vector.load %arg6[%c0_20, %c0_21, %c0_22] : memref<1x2x128xf32, #tpu.memory_space<vmem>>, vector<1x2x128xf32>
    %62 = vector.shape_cast %61 : vector<1x2x128xf32> to vector<2x128xf32>
    %63 = vector.shape_cast %60 : vector<2x128xf32> to vector<1x2x128xf32>
    tpu.vector_store %arg6[%c0_20, %c0_21, %c0_22], %63 {strides = array<i32>} : memref<1x2x128xf32, #tpu.memory_space<vmem>>, vector<1x2x128xf32>,
    %c0_23 = arith.constant 0 : index
    %c0_24 = arith.constant 0 : index
    %64 = vector.load %arg3[%c0_23, %c0_24] : memref<64x128xf32, #tpu.memory_space<vmem>>, vector<64x128xf32>
    %cst_25 = arith.constant dense<0.000000e+00> : vector<32x128xf32>
    %65 = tpu.matmul %0, %64, %cst_25 {dimension_numbers = #tpu.dot_dimension_numbers<[1], [0], [0], [1], [0, 0, 1, 1], [], []>} : vector<32x64xf32>, vector<64x128xf32>, vector<32x128xf32> -> vector<32x128xf32>
    %c0_26 = arith.constant 0 : index
    %c0_27 = arith.constant 0 : index
    %66 = vector.load %arg5[%c0_26, %c0_27] : memref<32x128xf32, #tpu.memory_space<vmem>>, vector<32x128xf32>
    tpu.vector_store %arg5[%c0_26, %c0_27], %65 {strides = array<i32>} : memref<32x128xf32, #tpu.memory_space<vmem>>, vector<32x128xf32>,
    %cst_28 = arith.constant dense<0.000000e+00> : vector<128xf32>
    %67 = vector.multi_reduction <add>, %65, %cst_28 [0] : vector<32x128xf32> to vector<128xf32>
    %68 = vector.shape_cast %67 : vector<128xf32> to vector<1x128xf32>
    %69 = arith.mulf %65, %65 : vector<32x128xf32>
    %cst_29 = arith.constant dense<0.000000e+00> : vector<128xf32>
    %70 = vector.multi_reduction <add>, %69, %cst_29 [0] : vector<32x128xf32> to vector<128xf32>
    %71 = vector.shape_cast %70 : vector<128xf32> to vector<1x128xf32>
    %72 = tpu.concatenate %68, %71 in 0 : vector<1x128xf32>, vector<1x128xf32> -> vector<2x128xf32>
    %c0_30 = arith.constant 0 : index
    %c0_31 = arith.constant 0 : index
    %c0_32 = arith.constant 0 : index
    %73 = vector.load %arg7[%c0_30, %c0_31, %c0_32] : memref<1x2x128xf32, #tpu.memory_space<vmem>>, vector<1x2x128xf32>
    %74 = vector.shape_cast %73 : vector<1x2x128xf32> to vector<2x128xf32>
    %75 = vector.shape_cast %72 : vector<2x128xf32> to vector<1x2x128xf32>
    tpu.vector_store %arg7[%c0_30, %c0_31, %c0_32], %75 {strides = array<i32>} : memref<1x2x128xf32, #tpu.memory_space<vmem>>, vector<1x2x128xf32>,
    return
  }
  func.func @transform_0(%arg0: i32) -> (i32, i32) {
    %c0_i32 = arith.constant 0 : i32
    %c0_i32_0 = arith.constant 0 : i32
    return %arg0, %c0_i32 : i32, i32
  }
  func.func @transform_1(%arg0: i32) -> (i32, i32) {
    %c0_i32 = arith.constant 0 : i32
    %c0_i32_0 = arith.constant 0 : i32
    %c0_i32_1 = arith.constant 0 : i32
    return %c0_i32, %c0_i32_0 : i32, i32
  }
  func.func @transform_2(%arg0: i32) -> (i32, i32) {
    %c0_i32 = arith.constant 0 : i32
    %c0_i32_0 = arith.constant 0 : i32
    %c0_i32_1 = arith.constant 0 : i32
    return %c0_i32, %c0_i32_0 : i32, i32
  }
  func.func @transform_3(%arg0: i32) -> (i32, i32) {
    %c0_i32 = arith.constant 0 : i32
    %c0_i32_0 = arith.constant 0 : i32
    return %arg0, %c0_i32 : i32, i32
  }
  func.func @transform_4(%arg0: i32) -> (i32, i32) {
    %c0_i32 = arith.constant 0 : i32
    %c0_i32_0 = arith.constant 0 : i32
    return %arg0, %c0_i32 : i32, i32
  }
  func.func @transform_5(%arg0: i32) -> (i32, i32, i32) {
    %c0_i32 = arith.constant 0 : i32
    %c0_i32_0 = arith.constant 0 : i32
    %c0_i32_1 = arith.constant 0 : i32
    return %arg0, %c0_i32, %c0_i32_0 : i32, i32, i32
  }
  func.func @transform_6(%arg0: i32) -> (i32, i32, i32) {
    %c0_i32 = arith.constant 0 : i32
    %c0_i32_0 = arith.constant 0 : i32
    %c0_i32_1 = arith.constant 0 : i32
    return %arg0, %c0_i32, %c0_i32_0 : i32, i32, i32
  }
}

module attributes {stable_mosaic.version = 11 : i64} {
  func.func @kernel(%arg0: i32, %arg1: memref<32x128xf32, #tpu.memory_space<vmem>>, %arg2: memref<1x2x128xf32, #tpu.memory_space<vmem>>, %arg3: memref<2x128xf32, #tpu.memory_space<vmem>>, %arg4: memref<128x128xf32, #tpu.memory_space<vmem>>, %arg5: memref<384x128xf32, #tpu.memory_space<vmem>>, %arg6: memref<32x128xf32, #tpu.memory_space<vmem>>, %arg7: memref<1x2x128xf32, #tpu.memory_space<vmem>>) attributes {dimension_semantics = [#tpu.dimension_semantics<parallel>], iteration_bounds = array<i64: 1>, scalar_prefetch = 0 : i64, scratch_operands = 0 : i64, tpu.core_type = #tpu.core_type<tc>, window_params = [{transform_indices = @transform_0, window_bounds = array<i64: 32, 128>}, {pipeline_mode = #tpu.pipeline_mode<synchronous>, transform_indices = @transform_1, window_bounds = array<i64: 1, 2, 128>}, {pipeline_mode = #tpu.pipeline_mode<synchronous>, transform_indices = @transform_2, window_bounds = array<i64: 2, 128>}, {pipeline_mode = #tpu.pipeline_mode<synchronous>, transform_indices = @transform_3, window_bounds = array<i64: 128, 128>}, {pipeline_mode = #tpu.pipeline_mode<synchronous>, transform_indices = @transform_4, window_bounds = array<i64: 384, 128>}, {transform_indices = @transform_5, window_bounds = array<i64: 32, 128>}, {transform_indices = @transform_6, window_bounds = array<i64: 1, 2, 128>}]} {
    %c0 = arith.constant 0 : index
    %c0_0 = arith.constant 0 : index
    %c0_1 = arith.constant 0 : index
    %0 = vector.load %arg2[%c0, %c0_0, %c0_1] : memref<1x2x128xf32, #tpu.memory_space<vmem>>, vector<1x2x128xf32>
    %cst = arith.constant dense<0.000000e+00> : vector<2x128xf32>
    %1 = vector.multi_reduction <add>, %0, %cst [0] : vector<1x2x128xf32> to vector<2x128xf32>
    %c0_2 = arith.constant 0 : index
    %c0_3 = arith.constant 0 : index
    %2 = vector.load %arg4[%c0_2, %c0_3] : memref<128x128xf32, #tpu.memory_space<vmem>>, vector<128x128xf32>
    %cst_4 = arith.constant dense<0.000000e+00> : vector<2x128xf32>
    %3 = tpu.matmul %1, %2, %cst_4 {dimension_numbers = #tpu.dot_dimension_numbers<[1], [0], [0], [1], [0, 0, 1, 1], [], []>} : vector<2x128xf32>, vector<128x128xf32>, vector<2x128xf32> -> vector<2x128xf32>
    %4 = vector.extract_strided_slice %3 {offsets = [0, 0], sizes = [1, 128], strides = [1, 1]} : vector<2x128xf32> to vector<1x128xf32>
    %cst_5 = arith.constant 5.120000e+02 : f32
    %5 = vector.broadcast %cst_5 : f32 to vector<1x128xf32>
    %6 = arith.divf %4, %5 : vector<1x128xf32>
    %7 = vector.extract_strided_slice %3 {offsets = [1, 0], sizes = [1, 128], strides = [1, 1]} : vector<2x128xf32> to vector<1x128xf32>
    %cst_6 = arith.constant 5.120000e+02 : f32
    %8 = vector.broadcast %cst_6 : f32 to vector<1x128xf32>
    %9 = arith.divf %7, %8 : vector<1x128xf32>
    %10 = arith.mulf %6, %6 : vector<1x128xf32>
    %11 = arith.subf %9, %10 : vector<1x128xf32>
    %c0_7 = arith.constant 0 : index
    %c0_8 = arith.constant 0 : index
    %12 = vector.load %arg3[%c0_7, %c0_8] : memref<2x128xf32, #tpu.memory_space<vmem>>, vector<2x128xf32>
    %13 = vector.extract_strided_slice %12 {offsets = [0, 0], sizes = [1, 128], strides = [1, 1]} : vector<2x128xf32> to vector<1x128xf32>
    %cst_9 = arith.constant 9.99999974E-6 : f32
    %14 = vector.broadcast %cst_9 : f32 to vector<1x128xf32>
    %15 = arith.addf %11, %14 : vector<1x128xf32>
    %16 = math.rsqrt %15 : vector<1x128xf32>
    %17 = arith.mulf %13, %16 : vector<1x128xf32>
    %18 = vector.extract_strided_slice %12 {offsets = [1, 0], sizes = [1, 128], strides = [1, 1]} : vector<2x128xf32> to vector<1x128xf32>
    %19 = arith.mulf %6, %17 : vector<1x128xf32>
    %20 = arith.subf %18, %19 : vector<1x128xf32>
    %c0_10 = arith.constant 0 : index
    %c0_11 = arith.constant 0 : index
    %21 = vector.load %arg1[%c0_10, %c0_11] : memref<32x128xf32, #tpu.memory_space<vmem>>, vector<32x128xf32>
    %22 = vector.broadcast %17 : vector<1x128xf32> to vector<32x128xf32>
    %23 = arith.mulf %21, %22 : vector<32x128xf32>
    %24 = vector.broadcast %20 : vector<1x128xf32> to vector<32x128xf32>
    %25 = arith.addf %23, %24 : vector<32x128xf32>
    %cst_12 = arith.constant 0.000000e+00 : f32
    %26 = vector.broadcast %cst_12 : f32 to vector<32x128xf32>
    %27 = arith.maximumf %25, %26 : vector<32x128xf32>
    %28 = tpu.iota {dimensions = array<i32: 0>} : vector<32x1xi32>
    %cst_13 = arith.constant 0.000000e+00 : f32
    %29 = vector.broadcast %cst_13 : f32 to vector<1x128xf32>
    %30 = vector.extract_strided_slice %27 {offsets = [0, 0], sizes = [31, 128], strides = [1, 1]} : vector<32x128xf32> to vector<31x128xf32>
    %31 = tpu.concatenate %29, %30 in 0 : vector<1x128xf32>, vector<31x128xf32> -> vector<32x128xf32>
    %32 = vector.extract_strided_slice %27 {offsets = [1, 0], sizes = [31, 128], strides = [1, 1]} : vector<32x128xf32> to vector<31x128xf32>
    %33 = tpu.concatenate %32, %29 in 0 : vector<31x128xf32>, vector<1x128xf32> -> vector<32x128xf32>
    %c16_i32 = arith.constant 16 : i32
    %c0_i32 = arith.constant 0 : i32
    %34 = arith.cmpi eq, %c16_i32, %c0_i32 : i32
    %c1_i32 = arith.constant 1 : i32
    %35 = arith.select %34, %c1_i32, %c16_i32 : i32
    %36 = vector.broadcast %35 : i32 to vector<32x1xi32>
    %37 = arith.remsi %28, %36 : vector<32x1xi32>
    %c0_i32_14 = arith.constant 0 : i32
    %38 = vector.broadcast %c0_i32_14 : i32 to vector<32x1xi32>
    %39 = arith.cmpi ne, %37, %38 : vector<32x1xi32>
    %c0_i32_15 = arith.constant 0 : i32
    %40 = vector.broadcast %c0_i32_15 : i32 to vector<32x1xi32>
    %41 = arith.cmpi slt, %37, %40 : vector<32x1xi32>
    %c0_i32_16 = arith.constant 0 : i32
    %42 = arith.cmpi slt, %35, %c0_i32_16 : i32
    %43 = vector.broadcast %42 : i1 to vector<32x1xi1>
    %44 = vector.broadcast %43 : vector<32x1xi1> to vector<32x1xi1>
    %45 = arith.xori %41, %44 : vector<32x1xi1>
    %46 = arith.andi %45, %39 : vector<32x1xi1>
    %47 = vector.broadcast %35 : i32 to vector<32x1xi32>
    %48 = arith.addi %37, %47 : vector<32x1xi32>
    %49 = arith.select %46, %48, %37 : vector<32x1xi1>, vector<32x1xi32>
    %c0_i32_17 = arith.constant 0 : i32
    %50 = vector.broadcast %c0_i32_17 : i32 to vector<32x1xi32>
    %51 = arith.cmpi ne, %49, %50 : vector<32x1xi32>
    %cst_18 = arith.constant 0.000000e+00 : f32
    %52 = vector.shape_cast %51 : vector<32x1xi1> to vector<32x1xi1>
    %53 = vector.broadcast %52 : vector<32x1xi1> to vector<32x128xi1>
    %54 = vector.broadcast %cst_18 : f32 to vector<32x128xf32>
    %55 = arith.select %53, %31, %54 : vector<32x128xi1>, vector<32x128xf32>
    %c16_i32_19 = arith.constant 16 : i32
    %c0_i32_20 = arith.constant 0 : i32
    %56 = arith.cmpi eq, %c16_i32_19, %c0_i32_20 : i32
    %c1_i32_21 = arith.constant 1 : i32
    %57 = arith.select %56, %c1_i32_21, %c16_i32_19 : i32
    %58 = vector.broadcast %57 : i32 to vector<32x1xi32>
    %59 = arith.remsi %28, %58 : vector<32x1xi32>
    %c0_i32_22 = arith.constant 0 : i32
    %60 = vector.broadcast %c0_i32_22 : i32 to vector<32x1xi32>
    %61 = arith.cmpi ne, %59, %60 : vector<32x1xi32>
    %c0_i32_23 = arith.constant 0 : i32
    %62 = vector.broadcast %c0_i32_23 : i32 to vector<32x1xi32>
    %63 = arith.cmpi slt, %59, %62 : vector<32x1xi32>
    %c0_i32_24 = arith.constant 0 : i32
    %64 = arith.cmpi slt, %57, %c0_i32_24 : i32
    %65 = vector.broadcast %64 : i1 to vector<32x1xi1>
    %66 = vector.broadcast %65 : vector<32x1xi1> to vector<32x1xi1>
    %67 = arith.xori %63, %66 : vector<32x1xi1>
    %68 = arith.andi %67, %61 : vector<32x1xi1>
    %69 = vector.broadcast %57 : i32 to vector<32x1xi32>
    %70 = arith.addi %59, %69 : vector<32x1xi32>
    %71 = arith.select %68, %70, %59 : vector<32x1xi1>, vector<32x1xi32>
    %c15_i32 = arith.constant 15 : i32
    %72 = vector.broadcast %c15_i32 : i32 to vector<32x1xi32>
    %73 = arith.cmpi ne, %71, %72 : vector<32x1xi32>
    %cst_25 = arith.constant 0.000000e+00 : f32
    %74 = vector.shape_cast %73 : vector<32x1xi1> to vector<32x1xi1>
    %75 = vector.broadcast %74 : vector<32x1xi1> to vector<32x128xi1>
    %76 = vector.broadcast %cst_25 : f32 to vector<32x128xf32>
    %77 = arith.select %75, %33, %76 : vector<32x128xi1>, vector<32x128xf32>
    %78 = tpu.concatenate %55, %27, %77 in 1 : vector<32x128xf32>, vector<32x128xf32>, vector<32x128xf32> -> vector<32x384xf32>
    %c0_26 = arith.constant 0 : index
    %c0_27 = arith.constant 0 : index
    %79 = vector.load %arg5[%c0_26, %c0_27] : memref<384x128xf32, #tpu.memory_space<vmem>>, vector<384x128xf32>
    %cst_28 = arith.constant dense<0.000000e+00> : vector<32x128xf32>
    %80 = tpu.matmul %78, %79, %cst_28 {dimension_numbers = #tpu.dot_dimension_numbers<[1], [0], [0], [1], [0, 0, 1, 1], [], []>} : vector<32x384xf32>, vector<384x128xf32>, vector<32x128xf32> -> vector<32x128xf32>
    %c0_29 = arith.constant 0 : index
    %c0_30 = arith.constant 0 : index
    %81 = vector.load %arg6[%c0_29, %c0_30] : memref<32x128xf32, #tpu.memory_space<vmem>>, vector<32x128xf32>
    tpu.vector_store %arg6[%c0_29, %c0_30], %80 {strides = array<i32>} : memref<32x128xf32, #tpu.memory_space<vmem>>, vector<32x128xf32>,
    %cst_31 = arith.constant dense<0.000000e+00> : vector<128xf32>
    %82 = vector.multi_reduction <add>, %80, %cst_31 [0] : vector<32x128xf32> to vector<128xf32>
    %83 = vector.shape_cast %82 : vector<128xf32> to vector<1x128xf32>
    %84 = arith.mulf %80, %80 : vector<32x128xf32>
    %cst_32 = arith.constant dense<0.000000e+00> : vector<128xf32>
    %85 = vector.multi_reduction <add>, %84, %cst_32 [0] : vector<32x128xf32> to vector<128xf32>
    %86 = vector.shape_cast %85 : vector<128xf32> to vector<1x128xf32>
    %87 = tpu.concatenate %83, %86 in 0 : vector<1x128xf32>, vector<1x128xf32> -> vector<2x128xf32>
    %c0_33 = arith.constant 0 : index
    %c0_34 = arith.constant 0 : index
    %c0_35 = arith.constant 0 : index
    %88 = vector.load %arg7[%c0_33, %c0_34, %c0_35] : memref<1x2x128xf32, #tpu.memory_space<vmem>>, vector<1x2x128xf32>
    %89 = vector.shape_cast %88 : vector<1x2x128xf32> to vector<2x128xf32>
    %90 = vector.shape_cast %87 : vector<2x128xf32> to vector<1x2x128xf32>
    tpu.vector_store %arg7[%c0_33, %c0_34, %c0_35], %90 {strides = array<i32>} : memref<1x2x128xf32, #tpu.memory_space<vmem>>, vector<1x2x128xf32>,
    return
  }
  func.func @transform_0(%arg0: i32) -> (i32, i32) {
    %c0_i32 = arith.constant 0 : i32
    %c0_i32_0 = arith.constant 0 : i32
    return %arg0, %c0_i32 : i32, i32
  }
  func.func @transform_1(%arg0: i32) -> (i32, i32, i32) {
    %c0_i32 = arith.constant 0 : i32
    %c0_i32_0 = arith.constant 0 : i32
    %c0_i32_1 = arith.constant 0 : i32
    %c0_i32_2 = arith.constant 0 : i32
    return %c0_i32, %c0_i32_0, %c0_i32_1 : i32, i32, i32
  }
  func.func @transform_2(%arg0: i32) -> (i32, i32) {
    %c0_i32 = arith.constant 0 : i32
    %c0_i32_0 = arith.constant 0 : i32
    %c0_i32_1 = arith.constant 0 : i32
    return %c0_i32, %c0_i32_0 : i32, i32
  }
  func.func @transform_3(%arg0: i32) -> (i32, i32) {
    %c0_i32 = arith.constant 0 : i32
    %c0_i32_0 = arith.constant 0 : i32
    %c0_i32_1 = arith.constant 0 : i32
    return %c0_i32, %c0_i32_0 : i32, i32
  }
  func.func @transform_4(%arg0: i32) -> (i32, i32) {
    %c0_i32 = arith.constant 0 : i32
    %c0_i32_0 = arith.constant 0 : i32
    %c0_i32_1 = arith.constant 0 : i32
    return %c0_i32, %c0_i32_0 : i32, i32
  }
  func.func @transform_5(%arg0: i32) -> (i32, i32) {
    %c0_i32 = arith.constant 0 : i32
    %c0_i32_0 = arith.constant 0 : i32
    return %arg0, %c0_i32 : i32, i32
  }
  func.func @transform_6(%arg0: i32) -> (i32, i32, i32) {
    %c0_i32 = arith.constant 0 : i32
    %c0_i32_0 = arith.constant 0 : i32
    %c0_i32_1 = arith.constant 0 : i32
    return %arg0, %c0_i32, %c0_i32_0 : i32, i32, i32
  }
}

module attributes {stable_mosaic.version = 11 : i64} {
  func.func @kernel(%arg0: i32, %arg1: memref<32x128xf32, #tpu.memory_space<vmem>>, %arg2: memref<32x128xf32, #tpu.memory_space<vmem>>, %arg3: memref<1x2x128xf32, #tpu.memory_space<vmem>>, %arg4: memref<1x2x128xf32, #tpu.memory_space<vmem>>, %arg5: memref<2x128xf32, #tpu.memory_space<vmem>>, %arg6: memref<2x128xf32, #tpu.memory_space<vmem>>, %arg7: memref<128x128xf32, #tpu.memory_space<vmem>>, %arg8: memref<32x128xf32, #tpu.memory_space<vmem>>) attributes {dimension_semantics = [#tpu.dimension_semantics<parallel>], iteration_bounds = array<i64: 1>, scalar_prefetch = 0 : i64, scratch_operands = 0 : i64, tpu.core_type = #tpu.core_type<tc>, window_params = [{transform_indices = @transform_0, window_bounds = array<i64: 32, 128>}, {transform_indices = @transform_1, window_bounds = array<i64: 32, 128>}, {pipeline_mode = #tpu.pipeline_mode<synchronous>, transform_indices = @transform_2, window_bounds = array<i64: 1, 2, 128>}, {pipeline_mode = #tpu.pipeline_mode<synchronous>, transform_indices = @transform_3, window_bounds = array<i64: 1, 2, 128>}, {pipeline_mode = #tpu.pipeline_mode<synchronous>, transform_indices = @transform_4, window_bounds = array<i64: 2, 128>}, {pipeline_mode = #tpu.pipeline_mode<synchronous>, transform_indices = @transform_5, window_bounds = array<i64: 2, 128>}, {pipeline_mode = #tpu.pipeline_mode<synchronous>, transform_indices = @transform_6, window_bounds = array<i64: 128, 128>}, {transform_indices = @transform_7, window_bounds = array<i64: 32, 128>}]} {
    %c0 = arith.constant 0 : index
    %c0_0 = arith.constant 0 : index
    %c0_1 = arith.constant 0 : index
    %0 = vector.load %arg3[%c0, %c0_0, %c0_1] : memref<1x2x128xf32, #tpu.memory_space<vmem>>, vector<1x2x128xf32>
    %cst = arith.constant dense<0.000000e+00> : vector<2x128xf32>
    %1 = vector.multi_reduction <add>, %0, %cst [0] : vector<1x2x128xf32> to vector<2x128xf32>
    %c0_2 = arith.constant 0 : index
    %c0_3 = arith.constant 0 : index
    %2 = vector.load %arg7[%c0_2, %c0_3] : memref<128x128xf32, #tpu.memory_space<vmem>>, vector<128x128xf32>
    %cst_4 = arith.constant dense<0.000000e+00> : vector<2x128xf32>
    %3 = tpu.matmul %1, %2, %cst_4 {dimension_numbers = #tpu.dot_dimension_numbers<[1], [0], [0], [1], [0, 0, 1, 1], [], []>} : vector<2x128xf32>, vector<128x128xf32>, vector<2x128xf32> -> vector<2x128xf32>
    %4 = vector.extract_strided_slice %3 {offsets = [0, 0], sizes = [1, 128], strides = [1, 1]} : vector<2x128xf32> to vector<1x128xf32>
    %cst_5 = arith.constant 5.120000e+02 : f32
    %5 = vector.broadcast %cst_5 : f32 to vector<1x128xf32>
    %6 = arith.divf %4, %5 : vector<1x128xf32>
    %7 = vector.extract_strided_slice %3 {offsets = [1, 0], sizes = [1, 128], strides = [1, 1]} : vector<2x128xf32> to vector<1x128xf32>
    %cst_6 = arith.constant 5.120000e+02 : f32
    %8 = vector.broadcast %cst_6 : f32 to vector<1x128xf32>
    %9 = arith.divf %7, %8 : vector<1x128xf32>
    %10 = arith.mulf %6, %6 : vector<1x128xf32>
    %11 = arith.subf %9, %10 : vector<1x128xf32>
    %c0_7 = arith.constant 0 : index
    %c0_8 = arith.constant 0 : index
    %12 = vector.load %arg5[%c0_7, %c0_8] : memref<2x128xf32, #tpu.memory_space<vmem>>, vector<2x128xf32>
    %13 = vector.extract_strided_slice %12 {offsets = [0, 0], sizes = [1, 128], strides = [1, 1]} : vector<2x128xf32> to vector<1x128xf32>
    %cst_9 = arith.constant 9.99999974E-6 : f32
    %14 = vector.broadcast %cst_9 : f32 to vector<1x128xf32>
    %15 = arith.addf %11, %14 : vector<1x128xf32>
    %16 = math.rsqrt %15 : vector<1x128xf32>
    %17 = arith.mulf %13, %16 : vector<1x128xf32>
    %18 = vector.extract_strided_slice %12 {offsets = [1, 0], sizes = [1, 128], strides = [1, 1]} : vector<2x128xf32> to vector<1x128xf32>
    %19 = arith.mulf %6, %17 : vector<1x128xf32>
    %20 = arith.subf %18, %19 : vector<1x128xf32>
    %c0_10 = arith.constant 0 : index
    %c0_11 = arith.constant 0 : index
    %c0_12 = arith.constant 0 : index
    %21 = vector.load %arg4[%c0_10, %c0_11, %c0_12] : memref<1x2x128xf32, #tpu.memory_space<vmem>>, vector<1x2x128xf32>
    %cst_13 = arith.constant dense<0.000000e+00> : vector<2x128xf32>
    %22 = vector.multi_reduction <add>, %21, %cst_13 [0] : vector<1x2x128xf32> to vector<2x128xf32>
    %c0_14 = arith.constant 0 : index
    %c0_15 = arith.constant 0 : index
    %23 = vector.load %arg7[%c0_14, %c0_15] : memref<128x128xf32, #tpu.memory_space<vmem>>, vector<128x128xf32>
    %cst_16 = arith.constant dense<0.000000e+00> : vector<2x128xf32>
    %24 = tpu.matmul %22, %23, %cst_16 {dimension_numbers = #tpu.dot_dimension_numbers<[1], [0], [0], [1], [0, 0, 1, 1], [], []>} : vector<2x128xf32>, vector<128x128xf32>, vector<2x128xf32> -> vector<2x128xf32>
    %25 = vector.extract_strided_slice %24 {offsets = [0, 0], sizes = [1, 128], strides = [1, 1]} : vector<2x128xf32> to vector<1x128xf32>
    %cst_17 = arith.constant 5.120000e+02 : f32
    %26 = vector.broadcast %cst_17 : f32 to vector<1x128xf32>
    %27 = arith.divf %25, %26 : vector<1x128xf32>
    %28 = vector.extract_strided_slice %24 {offsets = [1, 0], sizes = [1, 128], strides = [1, 1]} : vector<2x128xf32> to vector<1x128xf32>
    %cst_18 = arith.constant 5.120000e+02 : f32
    %29 = vector.broadcast %cst_18 : f32 to vector<1x128xf32>
    %30 = arith.divf %28, %29 : vector<1x128xf32>
    %31 = arith.mulf %27, %27 : vector<1x128xf32>
    %32 = arith.subf %30, %31 : vector<1x128xf32>
    %c0_19 = arith.constant 0 : index
    %c0_20 = arith.constant 0 : index
    %33 = vector.load %arg6[%c0_19, %c0_20] : memref<2x128xf32, #tpu.memory_space<vmem>>, vector<2x128xf32>
    %34 = vector.extract_strided_slice %33 {offsets = [0, 0], sizes = [1, 128], strides = [1, 1]} : vector<2x128xf32> to vector<1x128xf32>
    %cst_21 = arith.constant 9.99999974E-6 : f32
    %35 = vector.broadcast %cst_21 : f32 to vector<1x128xf32>
    %36 = arith.addf %32, %35 : vector<1x128xf32>
    %37 = math.rsqrt %36 : vector<1x128xf32>
    %38 = arith.mulf %34, %37 : vector<1x128xf32>
    %39 = vector.extract_strided_slice %33 {offsets = [1, 0], sizes = [1, 128], strides = [1, 1]} : vector<2x128xf32> to vector<1x128xf32>
    %40 = arith.mulf %27, %38 : vector<1x128xf32>
    %41 = arith.subf %39, %40 : vector<1x128xf32>
    %c0_22 = arith.constant 0 : index
    %c0_23 = arith.constant 0 : index
    %42 = vector.load %arg1[%c0_22, %c0_23] : memref<32x128xf32, #tpu.memory_space<vmem>>, vector<32x128xf32>
    %43 = vector.broadcast %17 : vector<1x128xf32> to vector<32x128xf32>
    %44 = arith.mulf %42, %43 : vector<32x128xf32>
    %45 = vector.broadcast %20 : vector<1x128xf32> to vector<32x128xf32>
    %46 = arith.addf %44, %45 : vector<32x128xf32>
    %c0_24 = arith.constant 0 : index
    %c0_25 = arith.constant 0 : index
    %47 = vector.load %arg2[%c0_24, %c0_25] : memref<32x128xf32, #tpu.memory_space<vmem>>, vector<32x128xf32>
    %48 = vector.broadcast %38 : vector<1x128xf32> to vector<32x128xf32>
    %49 = arith.mulf %47, %48 : vector<32x128xf32>
    %50 = vector.broadcast %41 : vector<1x128xf32> to vector<32x128xf32>
    %51 = arith.addf %49, %50 : vector<32x128xf32>
    %52 = arith.addf %46, %51 : vector<32x128xf32>
    %cst_26 = arith.constant 0.000000e+00 : f32
    %53 = vector.broadcast %cst_26 : f32 to vector<32x128xf32>
    %54 = arith.maximumf %52, %53 : vector<32x128xf32>
    %c0_27 = arith.constant 0 : index
    %c0_28 = arith.constant 0 : index
    %55 = vector.load %arg8[%c0_27, %c0_28] : memref<32x128xf32, #tpu.memory_space<vmem>>, vector<32x128xf32>
    tpu.vector_store %arg8[%c0_27, %c0_28], %54 {strides = array<i32>} : memref<32x128xf32, #tpu.memory_space<vmem>>, vector<32x128xf32>,
    return
  }
  func.func @transform_0(%arg0: i32) -> (i32, i32) {
    %c0_i32 = arith.constant 0 : i32
    %c0_i32_0 = arith.constant 0 : i32
    return %arg0, %c0_i32 : i32, i32
  }
  func.func @transform_1(%arg0: i32) -> (i32, i32) {
    %c0_i32 = arith.constant 0 : i32
    %c0_i32_0 = arith.constant 0 : i32
    return %arg0, %c0_i32 : i32, i32
  }
  func.func @transform_2(%arg0: i32) -> (i32, i32, i32) {
    %c0_i32 = arith.constant 0 : i32
    %c0_i32_0 = arith.constant 0 : i32
    %c0_i32_1 = arith.constant 0 : i32
    %c0_i32_2 = arith.constant 0 : i32
    return %c0_i32, %c0_i32_0, %c0_i32_1 : i32, i32, i32
  }
  func.func @transform_3(%arg0: i32) -> (i32, i32, i32) {
    %c0_i32 = arith.constant 0 : i32
    %c0_i32_0 = arith.constant 0 : i32
    %c0_i32_1 = arith.constant 0 : i32
    %c0_i32_2 = arith.constant 0 : i32
    return %c0_i32, %c0_i32_0, %c0_i32_1 : i32, i32, i32
  }
  func.func @transform_4(%arg0: i32) -> (i32, i32) {
    %c0_i32 = arith.constant 0 : i32
    %c0_i32_0 = arith.constant 0 : i32
    %c0_i32_1 = arith.constant 0 : i32
    return %c0_i32, %c0_i32_0 : i32, i32
  }
  func.func @transform_5(%arg0: i32) -> (i32, i32) {
    %c0_i32 = arith.constant 0 : i32
    %c0_i32_0 = arith.constant 0 : i32
    %c0_i32_1 = arith.constant 0 : i32
    return %c0_i32, %c0_i32_0 : i32, i32
  }
  func.func @transform_6(%arg0: i32) -> (i32, i32) {
    %c0_i32 = arith.constant 0 : i32
    %c0_i32_0 = arith.constant 0 : i32
    %c0_i32_1 = arith.constant 0 : i32
    return %c0_i32, %c0_i32_0 : i32, i32
  }
  func.func @transform_7(%arg0: i32) -> (i32, i32) {
    %c0_i32 = arith.constant 0 : i32
    %c0_i32_0 = arith.constant 0 : i32
    return %arg0, %c0_i32 : i32, i32
  }
}

</mosaic_0001>

<bundles_post_ra>
// kernel: tile.33
= control target key start
LH: loop header
LB: loop body
LE: loop exit
PB: predicated region body
PF: predicated region fallthrough
CT: control target
= control target key end

     0   :  { %s28_s0 = inlined_call_operand.vmem [shape: f32[8], index: 0, kind: input, shape index: {}]   ;;  %s29_s1 = inlined_call_operand.vmem [shape: f32[16,8], index: 1, kind: output, shape index: {}]  }
   0x1   :  { %v4_v0 = vld [vmem:[%s28_s0] ss:$0 sm:$0xff] }
   0x2   :  { %5 = vst [vmem:[%s29_s1] sm:$0xff] %v4_v0  ;;  %8 = vst [vmem:[%s29_s1 + $0x8] sm:$0xff] %v4_v0 }

// kernel: tile.38
= control target key start
LH: loop header
LB: loop body
LE: loop exit
PB: predicated region body
PF: predicated region fallthrough
CT: control target
= control target key end

     0   :  { %s133_s10 = smov 120   ;;  %s134_s11 = smov 104   ;;  %vm3_vm0 = vcmask 64512   ;;  %vm9_vm1 = vcmask 1048512   ;;  %vm15_vm2 = vcmask 982912   ;;  %vm21_vm3 = vcmask 917312   ;;  %s209_s0 = inlined_call_operand.vmem [shape: f32[16,8], index: 0, kind: input, shape index: {}]   ;;  %s210_s1 = inlined_call_operand.vmem [shape: f32[1,128], index: 1, kind: output, shape index: {}]  }
   0x1   :  { %v103_v0 = vld [vmem:[%s209_s0 + $0xf] sm:$0x1]   ;;  %v105_v1 = vld [vmem:[%s209_s0 + $0xd] sm:$0x1]   ;;  %v104_v2 = vld [vmem:[%s209_s0 + $0xe] sm:$0x1]  }
   0x2   :  { %7 = vrot.lane.b32.xlu0 %v103_v0, %s133_s10  ;;  %19 = vrot.lane.b32.xlu1 %v105_v1, %s134_s11  ;;  %v106_v3 = vld [vmem:[%s209_s0 + $0xc] sm:$0x1]   ;;  %s135_s16 = smov 112   ;;  %s136_s17 = smov 96   ;;  %v107_v4 = vld [vmem:[%s209_s0 + $0xb] sm:$0x1]  }
   0x3   :  { %v108_v5 = vld [vmem:[%s209_s0 + $0xa] sm:$0x1]   ;;  %v2_v6 = vld [vmem:[%s209_s0] sm:$0x1]   ;;  %s137_s24 = smov 88   ;;  %s138_s25 = smov 80  }
   0x4   :  { %4 = vst.msk [vmem:[#allocation0] sm:$0x1] %vm3_vm0, %v2_v6   ;;  %v109_v7 = vld [vmem:[%s209_s0 + $0x9] sm:$0x1]   ;;  %v110_v8 = vld [vmem:[%s209_s0 + $0x8] sm:$0x1]  }
   0x5   :  { %s139_s30 = smov 72   ;;  %s140_s2 = smov 64   ;;  %v111_v9 = vld [vmem:[%s209_s0 + $0x7] sm:$0x1]   ;;  %v112_v10 = vld [vmem:[%s209_s0 + $0x6] sm:$0x1]  }
   0x6   :  { %13 = vrot.lane.b32.xlu0 %v104_v2, %s135_s16  ;;  %25 = vrot.lane.b32.xlu1 %v106_v3, %s136_s17  ;;  %s141_s7 = smov 56   ;;  %s142_s8 = smov 48   ;;  %v113_v11 = vld [vmem:[%s209_s0 + $0x5] sm:$0x1]   ;;  %v114_v12 = vld [vmem:[%s209_s0 + $0x4] sm:$0x1]  }
   0x7   :  { %s143_s13 = smov 40   ;;  %s144_s14 = smov 32   ;;  %v115_v13 = vld [vmem:[%s209_s0 + $0x3] sm:$0x1]   ;;  %v116_v14 = vld [vmem:[%s209_s0 + $0x2] sm:$0x1]  }
   0x8   :  { %s145_s19 = smov 24   ;;  %s146_s20 = smov 16   ;;  %v117_v15 = vld [vmem:[%s209_s0 + $0x1] sm:$0x1]   ;;  %vm27_vm4 = vcmask 851712   ;;  %vm33_vm5 = vcmask 786112  }
   0x9   :  { %s147_s0 = smov 8   ;;  %vm39_vm6 = vcmask 720512   ;;  %vm45_vm7 = vcmask 654912   ;;  %vm51_vm8 = vcmask 589312   ;;  %vm57_vm9 = vcmask 523712  }
   0xa   :  { %31 = vrot.lane.b32.xlu0 %v107_v4, %s137_s24  ;;  %37 = vrot.lane.b32.xlu1 %v108_v5, %s138_s25  ;;  %vm63_vm10 = vcmask 458112   ;;  %vm69_vm11 = vcmask 392512   ;;  %vm75_vm12 = vcmask 326912   ;;  %vm81_vm13 = vcmask 261312  }
   0xb   :  { %vm87_vm14 = vcmask 195712   ;;  %vm93_vm15 = vcmask 130112  }
   0xe   :  { %43 = vrot.lane.b32.xlu0 %v109_v7, %s139_s30  ;;  %49 = vrot.lane.b32.xlu1 %v110_v8, %s140_s2 }
  0x12   :  { %55 = vrot.lane.b32.xlu0 %v111_v9, %s141_s7  ;;  %61 = vrot.lane.b32.xlu1 %v112_v10, %s142_s8 }
  0x16   :  { %67 = vrot.lane.b32.xlu0 %v113_v11, %s143_s13  ;;  %73 = vrot.lane.b32.xlu1 %v114_v12, %s144_s14 }
  0x1a   :  { %79 = vrot.lane.b32.xlu0 %v115_v13, %s145_s19  ;;  %85 = vrot.lane.b32.xlu1 %v116_v14, %s146_s20 }
  0x1e   :  { %91 = vrot.lane.b32.xlu0 %v117_v15, %s147_s0 }
  0x74   :  { %v8_v16 = vpop.permute.xlu0 %7   ;;  %v20_v17 = vpop.permute.xlu1 %19  }
  0x75   :  { %10 = vst.msk [vmem:[#allocation0] sm:$0x1] %vm9_vm1, %v8_v16  }
  0x78   :  { %v14_v18 = vpop.permute.xlu0 %13   ;;  %v26_v19 = vpop.permute.xlu1 %25  }
  0x79   :  { %16 = vst.msk [vmem:[#allocation0] sm:$0x1] %vm15_vm2, %v14_v18  }
  0x7a   :  { %22 = vst.msk [vmem:[#allocation0] sm:$0x1] %vm21_vm3, %v20_v17  }
  0x7b   :  { %28 = vst.msk [vmem:[#allocation0] sm:$0x1] %vm27_vm4, %v26_v19  }
  0x7c   :  { %v32_v20 = vpop.permute.xlu0 %31   ;;  %v38_v21 = vpop.permute.xlu1 %37  }
  0x7d   :  { %34 = vst.msk [vmem:[#allocation0] sm:$0x1] %vm33_vm5, %v32_v20  }
  0x7e   :  { %40 = vst.msk [vmem:[#allocation0] sm:$0x1] %vm39_vm6, %v38_v21  }
  0x80   :  { %v44_v22 = vpop.permute.xlu0 %43   ;;  %v50_v23 = vpop.permute.xlu1 %49  }
  0x81   :  { %46 = vst.msk [vmem:[#allocation0] sm:$0x1] %vm45_vm7, %v44_v22  }
  0x82   :  { %52 = vst.msk [vmem:[#allocation0] sm:$0x1] %vm51_vm8, %v50_v23  }
  0x84   :  { %v56_v24 = vpop.permute.xlu0 %55   ;;  %v62_v25 = vpop.permute.xlu1 %61  }
  0x85   :  { %58 = vst.msk [vmem:[#allocation0] sm:$0x1] %vm57_vm9, %v56_v24  }
  0x86   :  { %64 = vst.msk [vmem:[#allocation0] sm:$0x1] %vm63_vm10, %v62_v25  }
  0x88   :  { %v68_v26 = vpop.permute.xlu0 %67   ;;  %v74_v27 = vpop.permute.xlu1 %73  }
  0x89   :  { %70 = vst.msk [vmem:[#allocation0] sm:$0x1] %vm69_vm11, %v68_v26  }
  0x8a   :  { %76 = vst.msk [vmem:[#allocation0] sm:$0x1] %vm75_vm12, %v74_v27  }
  0x8c   :  { %v80_v28 = vpop.permute.xlu0 %79   ;;  %v86_v29 = vpop.permute.xlu1 %85  }
  0x8d   :  { %82 = vst.msk [vmem:[#allocation0] sm:$0x1] %vm81_vm13, %v80_v28  }
  0x8e   :  { %88 = vst.msk [vmem:[#allocation0] sm:$0x1] %vm87_vm14, %v86_v29  }
  0x90   :  { %v92_v30 = vpop.permute.xlu0 %91  }
  0x91   :  { %94 = vst.msk [vmem:[#allocation0] sm:$0x1] %vm93_vm15, %v92_v30  }
  0x98   :  { %v99_v31 = vld [vmem:[#allocation0] sm:$0x1] }
  0x99   :  { %102 = vst [vmem:[%s210_s1] sm:$0x1] %v99_v31 }

// kernel: basic_block_forward.3
= control target key start
LH: loop header
LB: loop body
LE: loop exit
PB: predicated region body
PF: predicated region fallthrough
CT: control target
= control target key end

     0   :  { %vm149_vm0 = vcmask 523264   ;;  %v492_v3 = vmov 0.0   ;;  %vm44_vm1 = vcmask 1046528   ;;  %s493_s27 = smov 64   ;;  %vm31_vm2 = vcmask 1040384   ;;  %s759_s0 = inlined_call_operand.vmem [shape: f32[32,64], index: 0, kind: input, shape index: {}]   ;;  %s760_s1 = inlined_call_operand.vmem [shape: f32[192,128], index: 1, kind: input, shape index: {}]   ;;  %s761_s2 = inlined_call_operand.vmem [shape: f32[64,128], index: 2, kind: input, shape index: {}]   ;;  %s762_s4 = inlined_call_operand.vmem [shape: f32[32,128], index: 4, kind: output, shape index: {1}]   ;;  %s763_s6 = inlined_call_operand.vmem [shape: f32[1,2,128], index: 6, kind: output, shape index: {3}]   ;;  %s764_s3 = inlined_call_operand.vmem [shape: f32[32,128], index: 3, kind: output, shape index: {0}]   ;;  %s765_s5 = inlined_call_operand.vmem [shape: f32[1,2,128], index: 5, kind: output, shape index: {2}]  }
   0x1   :  { %v532_v0 = vld [vmem:[%s759_s0] sm:$0xff]  ;;  %v537_v1 = vld [vmem:[%s759_s0 + $0x8] sm:$0xff]  ;;  %v542_v2 = vld [vmem:[%s759_s0 + $0x10] sm:$0xff]  ;;  %190 = vmatprep.subr.mxu0 %v492_v3  ;;  %v22_v52 = vlaneseq }
   0x2   :  { %137 = vrot.lane.b32.xlu0 %v532_v0, %s493_s27  ;;  %v33_v4 = vrot.slane %v537_v1, 7  ;;  %141 = vrot.lane.b32.xlu1 %v542_v2, %s493_s27  ;;  %v35_v5 = vrot.slane %v542_v2, 7  ;;  %v48_v6 = vrot.slane %v542_v2, 1  ;;  %v553_v7 = vld [vmem:[%s759_s0 + $0x18] sm:$0xff]  ;;  %v45_v9 = vrot.slane %v532_v0, 1  ;;  %v168_v12 = vld [vmem:[%s760_s1 + $0x70] sm:$0xff] }
   0x3   :  { %v169_v8 = vld [vmem:[%s760_s1 + $0x78] sm:$0xff]  ;;  %v37_v10 = vrot.slane %v553_v7, 7  ;;  %v50_v11 = vrot.slane %v553_v7, 1  ;;  %484 = vmatprep.mubr.msk.f32.mxu1 %vm149_vm0, %v532_v0  ;;  %v46_v13 = vrot.slane %v537_v1, 1  ;;  %v32_v14 = vrot.slane %v532_v0, 7  ;;  %v167_v16 = vld [vmem:[%s760_s1 + $0x68] sm:$0xff] }
   0x4   :  { %191 = vmatpush1.msra.mxu0 %v169_v8  ;;  %v570_v15 = vsel %vm31_vm2, %v33_v4, %v35_v5  ;;  %v166_v22 = vld [vmem:[%s760_s1 + $0x60] sm:$0xff]  ;;  %v310_v23 = vld [vmem:[%s761_s2 + $0x38] sm:$0xff]  ;;  %v309_v24 = vld [vmem:[%s761_s2 + $0x30] sm:$0xff]  ;;  %v23_v53 = vshrl.u32 %v22_v52, 7 }
   0x5   :  { %192 = vmatprep.subr.mxu0 %v492_v3  ;;  %v47_v17 = vsel %vm44_vm1, %v45_v9, %v46_v13  ;;  %v577_v18 = vsel %vm44_vm1, %v46_v13, %v48_v6  ;;  %v580_v19 = vsel %vm44_vm1, %v48_v6, %v50_v11  ;;  %v583_v20 = vsel %vm44_vm1, %v50_v11, 0.0  ;;  %468 = vmatprep.subr.mxu1 %v310_v23  ;;  %v165_v26 = vld [vmem:[%s760_s1 + $0x58] sm:$0xff]  ;;  %v308_v27 = vld [vmem:[%s761_s2 + $0x28] sm:$0xff]  ;;  %v164_v28 = vld [vmem:[%s760_s1 + $0x50] sm:$0xff] }
   0x6   :  { %193 = vmatpush1.msra.mxu0 %v168_v12  ;;  %139 = vrot.lane.b32.xlu0 %v537_v1, %s493_s27  ;;  %v590_v21 = vsel %vm31_vm2, %v32_v14, %v33_v4  ;;  %v604_v25 = vsel %vm31_vm2, %v35_v5, %v37_v10  ;;  %v307_v29 = vld [vmem:[%s761_s2 + $0x20] sm:$0xff]  ;;  %v163_v30 = vld [vmem:[%s760_s1 + $0x48] sm:$0xff]  ;;  %v306_v31 = vld [vmem:[%s761_s2 + $0x18] sm:$0xff]  ;;  %v24_v54 = vadd.s32 8, %v23_v53  ;;  %v61_v55 = vand.u32 15, %v23_v53 }
   0x7   :  { %143 = vrot.lane.b32.xlu1 %v553_v7, %s493_s27  ;;  %194 = vmatprep.subr.mxu0 %v492_v3  ;;  %v162_v32 = vld [vmem:[%s760_s1 + $0x40] sm:$0xff]  ;;  %v305_v33 = vld [vmem:[%s761_s2 + $0x10] sm:$0xff]  ;;  %v161_v34 = vld [vmem:[%s760_s1 + $0x38] sm:$0xff]  ;;  %v25_v57 = vadd.s32 16, %v23_v53  ;;  %v43_v58 = vsel %vm31_vm2, 0.0, %v32_v14  ;;  %v26_v60 = vadd.s32 24, %v23_v53 }
   0x8   :  { %448 = vmatprep.mubr.msk.f32.mxu0 %vm149_vm0, %v47_v17  ;;  %195 = vmatpush1.msra.mxu0 %v167_v16  ;;  %v304_v35 = vld [vmem:[%s761_s2 + $0x8] sm:$0xff]  ;;  %v160_v36 = vld [vmem:[%s760_s1 + $0x30] sm:$0xff]  ;;  %v303_v37 = vld [vmem:[%s761_s2] sm:$0xff]  ;;  %v68_v56 = vand.u32 15, %v24_v54  ;;  %vm105_vm3 = vcmp.ne.s32.totalorder %v61_v55, 0 }
   0x9   :  { %196 = vmatprep.subr.mxu0 %v492_v3  ;;  %469 = vmatpush3.msra.mxu1 %v310_v23  ;;  %v159_v38 = vld [vmem:[%s760_s1 + $0x28] sm:$0xff]  ;;  %v158_v39 = vld [vmem:[%s760_s1 + $0x20] sm:$0xff]  ;;  %v157_v40 = vld [vmem:[%s760_s1 + $0x18] sm:$0xff]  ;;  %v75_v59 = vand.u32 15, %v25_v57  ;;  %v117_v61 = vsel %vm105_vm3, %v43_v58, 0.0 }
   0xa   :  { %197 = vmatpush1.msra.mxu0 %v166_v22  ;;  %470 = vmatprep.subr.mxu1 %v309_v24  ;;  %v156_v41 = vld [vmem:[%s760_s1 + $0x10] sm:$0xff]  ;;  %v155_v42 = vld [vmem:[%s760_s1 + $0x8] sm:$0xff]  ;;  %v154_v43 = vld [vmem:[%s760_s1] sm:$0xff]  ;;  %vm122_vm4 = vcmp.ne.s32.totalorder %v68_v56, 15 }
   0xb   :  { %198 = vmatprep.subr.mxu0 %v492_v3  ;;  %471 = vmatpush3.msra.mxu1 %v309_v24  ;;  %v177_v44 = vld [vmem:[%s760_s1 + $0xb8] sm:$0xff]  ;;  %v176_v45 = vld [vmem:[%s760_s1 + $0xb0] sm:$0xff]  ;;  %v175_v46 = vld [vmem:[%s760_s1 + $0xa8] sm:$0xff]  ;;  %v134_v63 = vsel %vm122_vm4, %v577_v18, 0.0  ;;  %vm107_vm5 = vcmp.ne.s32.totalorder %v75_v59, 0 }
   0xc   :  { %199 = vmatpush1.msra.mxu0 %v165_v26  ;;  %472 = vmatprep.subr.mxu1 %v308_v27  ;;  %v174_v47 = vld [vmem:[%s760_s1 + $0xa0] sm:$0xff]  ;;  %v173_v48 = vld [vmem:[%s760_s1 + $0x98] sm:$0xff]  ;;  %v172_v49 = vld [vmem:[%s760_s1 + $0x90] sm:$0xff]  ;;  %v119_v0 = vsel %vm107_vm5, %v570_v15, 0.0 }
   0xd   :  { %200 = vmatprep.subr.mxu0 %v492_v3  ;;  %473 = vmatpush3.msra.mxu1 %v308_v27  ;;  %v171_v50 = vld [vmem:[%s760_s1 + $0x88] sm:$0xff]  ;;  %v170_v51 = vld [vmem:[%s760_s1 + $0x80] sm:$0xff] }
   0xe   :  { %201 = vmatpush1.msra.mxu0 %v164_v28  ;;  %474 = vmatprep.subr.mxu1 %v307_v29 }
   0xf   :  { %202 = vmatprep.subr.mxu0 %v492_v3  ;;  %475 = vmatpush3.msra.mxu1 %v307_v29 }
  0x10   :  { %203 = vmatpush1.msra.mxu0 %v163_v30  ;;  %476 = vmatprep.subr.mxu1 %v306_v31 }
  0x11   :  { %204 = vmatprep.subr.mxu0 %v492_v3  ;;  %477 = vmatpush3.msra.mxu1 %v306_v31 }
  0x12   :  { %205 = vmatpush1.msra.mxu0 %v162_v32  ;;  %478 = vmatprep.subr.mxu1 %v305_v33 }
  0x13   :  { %206 = vmatprep.subr.mxu0 %v492_v3  ;;  %479 = vmatpush3.msra.mxu1 %v305_v33 }
  0x14   :  { %207 = vmatpush1.msra.mxu0 %v161_v34  ;;  %480 = vmatprep.subr.mxu1 %v304_v35 }
  0x15   :  { %208 = vmatprep.subr.mxu0 %v492_v3  ;;  %481 = vmatpush3.msra.mxu1 %v304_v35 }
  0x16   :  { %209 = vmatpush1.msra.mxu0 %v160_v36  ;;  %482 = vmatprep.subr.mxu1 %v303_v37 }
  0x17   :  { %210 = vmatprep.subr.mxu0 %v492_v3  ;;  %483 = vmatpush3.msra.mxu1 %v303_v37 }
  0x18   :  { %211 = vmatpush1.msra.mxu0 %v159_v38  ;;  %485 = vmatmul.mubr.msk.f32.vlgmr.msra.gmra.mxu1 %vm149_vm0, %v537_v1 }
  0x19   :  { %212 = vmatprep.subr.mxu0 %v492_v3  ;;  %487 = vmatprep.mubr.msk.f32.mxu1 %vm149_vm0, %v542_v2  ;;  %v82_v2 = vand.u32 15, %v26_v60 }
  0x1a   :  { %213 = vmatpush1.msra.mxu0 %v158_v39 }
  0x1b   :  { %214 = vmatprep.subr.mxu0 %v492_v3  ;;  %vm124_vm6 = vcmp.ne.s32.totalorder %v82_v2, 15 }
  0x1c   :  { %215 = vmatpush1.msra.mxu0 %v157_v40  ;;  %488 = vmatmul.mubr.msk.f32.gmra.mxu1 %vm149_vm0, %v553_v7  ;;  %v136_v8 = vsel %vm124_vm6, %v583_v20, 0.0 }
  0x1d   :  { %216 = vmatprep.subr.mxu0 %v492_v3 }
  0x1e   :  { %217 = vmatpush1.msra.mxu0 %v156_v41 }
  0x1f   :  { %218 = vmatprep.subr.mxu0 %v492_v3 }
  0x20   :  { %219 = vmatpush1.msra.mxu0 %v155_v42 }
  0x21   :  { %220 = vmatprep.subr.mxu0 %v492_v3 }
  0x22   :  { %221 = vmatpush1.msra.mxu0 %v154_v43 }
  0x23   :  { %238 = vmatprep.subr.mxu0 %v492_v3 }
  0x24   :  { %239 = vmatpush2.msra.mxu0 %v177_v44 }
  0x25   :  { %240 = vmatprep.subr.mxu0 %v492_v3 }
  0x26   :  { %241 = vmatpush2.msra.mxu0 %v176_v45 }
  0x27   :  { %242 = vmatprep.subr.mxu0 %v492_v3 }
  0x28   :  { %243 = vmatpush2.msra.mxu0 %v175_v46 }
  0x29   :  { %244 = vmatprep.subr.mxu0 %v492_v3 }
  0x2a   :  { %245 = vmatpush2.msra.mxu0 %v174_v47 }
  0x2b   :  { %246 = vmatprep.subr.mxu0 %v492_v3 }
  0x2c   :  { %247 = vmatpush2.msra.mxu0 %v173_v48 }
  0x2d   :  { %248 = vmatprep.subr.mxu0 %v492_v3 }
  0x2e   :  { %249 = vmatpush2.msra.mxu0 %v172_v49 }
  0x2f   :  { %250 = vmatprep.subr.mxu0 %v492_v3 }
  0x30   :  { %251 = vmatpush2.msra.mxu0 %v171_v50 }
  0x31   :  { %252 = vmatprep.subr.mxu0 %v492_v3 }
  0x32   :  { %253 = vmatpush2.msra.mxu0 %v170_v51 }
  0x74   :  { %v138_v62 = vpop.permute.xlu0 %137  ;;  %v142_v3 = vpop.permute.xlu1 %141 }
  0x75   :  { %v150_v1 = vsel %vm149_vm0, %v117_v61, %v138_v62  ;;  %v152_v6 = vsel %vm149_vm0, %v119_v0, %v142_v3 }
  0x76   :  { %255 = vmatmul.mubr.f32.vlgmr.msra.gmra.mxu0 %v150_v1 }
  0x77   :  { %449 = vmatprep.mubr.msk.f32.mxu0 %vm149_vm0, %v134_v63 }
  0x78   :  { %v140_v4 = vpop.permute.xlu0 %139 }
  0x79   :  { %v151_v5 = vsel %vm149_vm0, %v590_v21, %v140_v4  ;;  %v144_v7 = vpop.permute.xlu1 %143 }
  0x7a   :  { %260 = vmatmul.mubr.f32.gmra.mxu0 %v151_v5  ;;  %v153_v9 = vsel %vm149_vm0, %v604_v25, %v144_v7 }
  0x7b   :  { %450 = vmatprep.mubr.msk.f32.mxu0 %vm149_vm0, %v580_v19 }
  0x7e   :  { %265 = vmatmul.mubr.f32.gmra.mxu0 %v152_v6 }
  0x7f   :  { %451 = vmatprep.mubr.msk.f32.mxu0 %vm149_vm0, %v136_v8 }
  0x82   :  { %270 = vmatmul.mubr.f32.gmra.mxu0 %v153_v9 }
  0xd8   :  { %v486_v10 = vpop.f32.mrf.mxu1 }
  0xd9   :  { %405 = vst [vmem:[%s762_s4 + $0x8] sm:$0xff] %v486_v10  ;;  %v418_v11 = vmul.f32 %v486_v10, %v486_v10 }
  0xda   :  { %v385_v12 = vpop.f32.mrf.mxu1 }
  0xdb   :  { %404 = vst [vmem:[%s762_s4] sm:$0xff] %v385_v12  ;;  %v408_v13 = vadd.f32 %v486_v10, %v385_v12  ;;  %v417_v14 = vmul.f32 %v385_v12, %v385_v12 }
  0xdc   :  { %v489_v15 = vpop.f32.mrf.mxu1 }
  0xdd   :  { %v421_v16 = vadd.f32 %v418_v11, %v417_v14  ;;  %407 = vst [vmem:[%s762_s4 + $0x18] sm:$0xff] %v489_v15  ;;  %v420_v18 = vmul.f32 %v489_v15, %v489_v15 }
  0xde   :  { %v395_v17 = vpop.f32.mrf.mxu1 }
  0xdf   :  { %406 = vst [vmem:[%s762_s4 + $0x10] sm:$0xff] %v395_v17  ;;  %v409_v19 = vadd.f32 %v408_v13, %v395_v17  ;;  %v419_v20 = vmul.f32 %v395_v17, %v395_v17 }
  0xe1   :  { %v410_v21 = vadd.f32 %v489_v15, %v409_v19  ;;  %v422_v22 = vadd.f32 %v421_v16, %v419_v20 }
  0xe3   :  { %v411_v23 = vrot.slane %v410_v21, 4  ;;  %v423_v24 = vadd.f32 %v422_v22, %v420_v18 }
  0xe5   :  { %v412_v25 = vadd.f32 %v411_v23, %v410_v21  ;;  %v424_v26 = vrot.slane %v423_v24, 4 }
  0xe7   :  { %v413_v27 = vrot.slane %v412_v25, 2  ;;  %v425_v28 = vadd.f32 %v424_v26, %v423_v24 }
  0xe9   :  { %v414_v29 = vadd.f32 %v413_v27, %v412_v25  ;;  %v426_v30 = vrot.slane %v425_v28, 2 }
  0xeb   :  { %v415_v31 = vrot.slane %v414_v29, 1  ;;  %v427_v32 = vadd.f32 %v426_v30, %v425_v28 }
  0xed   :  { %v416_v33 = vadd.f32 %v415_v31, %v414_v29  ;;  %v428_v34 = vrot.slane %v427_v32, 1 }
  0xef   :  { %v429_v35 = vadd.f32 %v428_v34, %v427_v32 }
  0xf1   :  { %v430_v36 = vsel %vm31_vm2, %v416_v33, %v429_v35 }
  0xf2   :  { %431 = vst [vmem:[%s763_s6] sm:$0x3] %v430_v36 }
 0x136   :  { %v256_v37 = vpop.f32.mrf.mxu0 }
 0x137   :  { %275 = vst [vmem:[%s764_s3] sm:$0xff] %v256_v37  ;;  %v288_v43 = vmul.f32 %v256_v37, %v256_v37 }
 0x138   :  { %v258_v38 = vpop.f32.mrf.mxu0 }
 0x13a   :  { %v261_v39 = vpop.f32.mrf.mxu0 }
 0x13b   :  { %276 = vst [vmem:[%s764_s3 + $0x8] sm:$0xff] %v261_v39  ;;  %v289_v41 = vmul.f32 %v261_v39, %v261_v39  ;;  %v279_v44 = vadd.f32 %v261_v39, %v256_v37 }
 0x13c   :  { %v263_v40 = vpop.f32.mrf.mxu0 }
 0x13d   :  { %v292_v47 = vadd.f32 %v289_v41, %v288_v43 }
 0x13e   :  { %v266_v42 = vpop.f32.mrf.mxu0 }
 0x13f   :  { %277 = vst [vmem:[%s764_s3 + $0x10] sm:$0xff] %v266_v42  ;;  %v290_v45 = vmul.f32 %v266_v42, %v266_v42  ;;  %v280_v48 = vadd.f32 %v279_v44, %v266_v42 }
 0x140   :  { %v268_v46 = vpop.f32.mrf.mxu0 }
 0x141   :  { %v293_v50 = vadd.f32 %v292_v47, %v290_v45 }
 0x142   :  { %v271_v49 = vpop.f32.mrf.mxu0 }
 0x143   :  { %278 = vst [vmem:[%s764_s3 + $0x18] sm:$0xff] %v271_v49  ;;  %v281_v51 = vadd.f32 %v280_v48, %v271_v49  ;;  %v291_v52 = vmul.f32 %v271_v49, %v271_v49 }
 0x144   :  { %v273_v53 = vpop.f32.mrf.mxu0 }
 0x145   :  { %v282_v54 = vrot.slane %v281_v51, 4  ;;  %v294_v55 = vadd.f32 %v293_v50, %v291_v52 }
 0x147   :  { %v283_v56 = vadd.f32 %v282_v54, %v281_v51  ;;  %v295_v57 = vrot.slane %v294_v55, 4 }
 0x149   :  { %v284_v58 = vrot.slane %v283_v56, 2  ;;  %v296_v59 = vadd.f32 %v295_v57, %v294_v55 }
 0x14b   :  { %v285_v60 = vadd.f32 %v284_v58, %v283_v56  ;;  %v297_v61 = vrot.slane %v296_v59, 2 }
 0x14d   :  { %v286_v62 = vrot.slane %v285_v60, 1  ;;  %v298_v63 = vadd.f32 %v297_v61, %v296_v59 }
 0x14f   :  { %v299_v1 = vrot.slane %v298_v63, 1  ;;  %v287_v2 = vadd.f32 %v286_v62, %v285_v60 }
 0x151   :  { %v300_v3 = vadd.f32 %v299_v1, %v298_v63 }
 0x153   :  { %v301_v4 = vsel %vm31_vm2, %v287_v2, %v300_v3 }
 0x154   :  { %302 = vst [vmem:[%s765_s5] sm:$0x3] %v301_v4 }

// kernel: basic_block_forward.4
= control target key start
LH: loop header
LB: loop body
LE: loop exit
PB: predicated region body
PF: predicated region fallthrough
CT: control target
= control target key end

     0   :  { %v716_v0 = vmov 0.0   ;;  %vm717_vm0 = vmmov 0   ;;  %vm162_vm1 = vcmask 1040384   ;;  %vm175_vm3 = vcmask 1046528   ;;  %s1091_s3 = inlined_call_operand.vmem [shape: f32[128,128], index: 3, kind: input, shape index: {}]   ;;  %s1092_s1 = inlined_call_operand.vmem [shape: f32[1,2,128], index: 1, kind: input, shape index: {}]   ;;  %s1093_s4 = inlined_call_operand.vmem [shape: f32[384,128], index: 4, kind: input, shape index: {}]   ;;  %s1094_s2 = inlined_call_operand.vmem [shape: f32[2,128], index: 2, kind: input, shape index: {}]   ;;  %s1095_s0 = inlined_call_operand.vmem [shape: f32[32,128], index: 0, kind: input, shape index: {}]   ;;  %s1096_s5 = inlined_call_operand.vmem [shape: f32[32,128], index: 5, kind: output, shape index: {0}]   ;;  %s1097_s6 = inlined_call_operand.vmem [shape: f32[1,2,128], index: 6, kind: output, shape index: {1}]  }
   0x1   :  { %607 = vmatprep.subr.mxu0 %v716_v0  ;;  %v39_v1 = vld [vmem:[%s1091_s3 + $0x78] sm:$0xff]  ;;  %v38_v2 = vld [vmem:[%s1091_s3 + $0x70] sm:$0xff]  ;;  %639 = vmatprep.mubr.msk.f32.mxu0 %vm717_vm0, %v716_v0  ;;  %v37_v3 = vld [vmem:[%s1091_s3 + $0x68] sm:$0xff] }
   0x2   :  { %608 = vmatpush3.msra.mxu0 %v39_v1  ;;  %v36_v4 = vld [vmem:[%s1091_s3 + $0x60] sm:$0xff]  ;;  %v35_v5 = vld [vmem:[%s1091_s3 + $0x58] sm:$0xff]  ;;  %v34_v6 = vld [vmem:[%s1091_s3 + $0x50] sm:$0xff] }
   0x3   :  { %609 = vmatprep.subr.mxu0 %v716_v0  ;;  %v33_v7 = vld [vmem:[%s1091_s3 + $0x48] sm:$0xff]  ;;  %v32_v8 = vld [vmem:[%s1091_s3 + $0x40] sm:$0xff]  ;;  %v31_v9 = vld [vmem:[%s1091_s3 + $0x38] sm:$0xff] }
   0x4   :  { %610 = vmatpush3.msra.mxu0 %v38_v2  ;;  %v30_v10 = vld [vmem:[%s1091_s3 + $0x30] sm:$0xff]  ;;  %v29_v11 = vld [vmem:[%s1091_s3 + $0x28] sm:$0xff]  ;;  %v28_v12 = vld [vmem:[%s1091_s3 + $0x20] sm:$0xff] }
   0x5   :  { %611 = vmatprep.subr.mxu0 %v716_v0  ;;  %v27_v13 = vld [vmem:[%s1091_s3 + $0x18] sm:$0xff]  ;;  %v26_v14 = vld [vmem:[%s1091_s3 + $0x10] sm:$0xff]  ;;  %v25_v15 = vld [vmem:[%s1091_s3 + $0x8] sm:$0xff] }
   0x6   :  { %612 = vmatpush3.msra.mxu0 %v37_v3  ;;  %v24_v16 = vld [vmem:[%s1091_s3] sm:$0xff]  ;;  %v299_v18 = vld [vmem:[%s1093_s4 + $0xf8] sm:$0xff]  ;;  %v298_v20 = vld [vmem:[%s1093_s4 + $0xf0] sm:$0xff] }
   0x7   :  { %613 = vmatprep.subr.mxu0 %v716_v0  ;;  %v22_v17 = vld [vmem:[%s1092_s1] sm:$0x3]  ;;  %543 = vmatprep.subr.mxu1 %v299_v18  ;;  %v283_v19 = vld [vmem:[%s1093_s4 + $0x78] sm:$0xff]  ;;  %v282_v22 = vld [vmem:[%s1093_s4 + $0x70] sm:$0xff] }
   0x8   :  { %614 = vmatpush3.msra.mxu0 %v36_v4  ;;  %544 = vmatpush3.msra.mxu1 %v283_v19  ;;  %v816_v21 = vld [vmem:[%s1093_s4 + $0x178] sm:$0xff]  ;;  %v297_v23 = vld [vmem:[%s1093_s4 + $0xe8] sm:$0xff]  ;;  %v829_v24 = vld [vmem:[%s1093_s4 + $0x170] sm:$0xff] }
   0x9   :  { %615 = vmatprep.subr.mxu0 %v716_v0  ;;  %545 = vmatprep.subr.mxu1 %v298_v20  ;;  %v281_v25 = vld [vmem:[%s1093_s4 + $0x68] sm:$0xff]  ;;  %v296_v26 = vld [vmem:[%s1093_s4 + $0xe0] sm:$0xff]  ;;  %v295_v29 = vld [vmem:[%s1093_s4 + $0xd8] sm:$0xff] }
   0xa   :  { %616 = vmatpush3.msra.mxu0 %v35_v5  ;;  %546 = vmatpush3.msra.mxu1 %v282_v22  ;;  %v842_v27 = vld [vmem:[%s1093_s4 + $0x168] sm:$0xff]  ;;  %v280_v28 = vld [vmem:[%s1093_s4 + $0x60] sm:$0xff]  ;;  %v279_v31 = vld [vmem:[%s1093_s4 + $0x58] sm:$0xff] }
   0xb   :  { %617 = vmatprep.subr.mxu0 %v716_v0  ;;  %547 = vmatprep.subr.mxu1 %v297_v23  ;;  %v855_v30 = vld [vmem:[%s1093_s4 + $0x160] sm:$0xff]  ;;  %v294_v32 = vld [vmem:[%s1093_s4 + $0xd0] sm:$0xff]  ;;  %v868_v33 = vld [vmem:[%s1093_s4 + $0x158] sm:$0xff] }
   0xc   :  { %618 = vmatpush3.msra.mxu0 %v34_v6  ;;  %548 = vmatpush3.msra.mxu1 %v281_v25  ;;  %v278_v34 = vld [vmem:[%s1093_s4 + $0x50] sm:$0xff]  ;;  %v293_v35 = vld [vmem:[%s1093_s4 + $0xc8] sm:$0xff]  ;;  %v292_v38 = vld [vmem:[%s1093_s4 + $0xc0] sm:$0xff] }
   0xd   :  { %619 = vmatprep.subr.mxu0 %v716_v0  ;;  %549 = vmatprep.subr.mxu1 %v296_v26  ;;  %v881_v36 = vld [vmem:[%s1093_s4 + $0x150] sm:$0xff]  ;;  %v277_v37 = vld [vmem:[%s1093_s4 + $0x48] sm:$0xff]  ;;  %v276_v40 = vld [vmem:[%s1093_s4 + $0x40] sm:$0xff] }
   0xe   :  { %620 = vmatpush3.msra.mxu0 %v33_v7  ;;  %550 = vmatpush3.msra.mxu1 %v280_v28  ;;  %v894_v39 = vld [vmem:[%s1093_s4 + $0x148] sm:$0xff]  ;;  %v291_v41 = vld [vmem:[%s1093_s4 + $0xb8] sm:$0xff]  ;;  %v907_v42 = vld [vmem:[%s1093_s4 + $0x140] sm:$0xff] }
   0xf   :  { %621 = vmatprep.subr.mxu0 %v716_v0  ;;  %551 = vmatprep.subr.mxu1 %v295_v29  ;;  %v275_v43 = vld [vmem:[%s1093_s4 + $0x38] sm:$0xff]  ;;  %v290_v44 = vld [vmem:[%s1093_s4 + $0xb0] sm:$0xff]  ;;  %v289_v47 = vld [vmem:[%s1093_s4 + $0xa8] sm:$0xff] }
  0x10   :  { %622 = vmatpush3.msra.mxu0 %v32_v8  ;;  %552 = vmatpush3.msra.mxu1 %v279_v31  ;;  %v920_v45 = vld [vmem:[%s1093_s4 + $0x138] sm:$0xff]  ;;  %v274_v46 = vld [vmem:[%s1093_s4 + $0x30] sm:$0xff]  ;;  %v273_v49 = vld [vmem:[%s1093_s4 + $0x28] sm:$0xff] }
  0x11   :  { %623 = vmatprep.subr.mxu0 %v716_v0  ;;  %553 = vmatprep.subr.mxu1 %v294_v32  ;;  %v933_v48 = vld [vmem:[%s1093_s4 + $0x130] sm:$0xff]  ;;  %v288_v50 = vld [vmem:[%s1093_s4 + $0xa0] sm:$0xff]  ;;  %v946_v51 = vld [vmem:[%s1093_s4 + $0x128] sm:$0xff] }
  0x12   :  { %624 = vmatpush3.msra.mxu0 %v31_v9  ;;  %554 = vmatpush3.msra.mxu1 %v278_v34  ;;  %v272_v52 = vld [vmem:[%s1093_s4 + $0x20] sm:$0xff]  ;;  %v287_v53 = vld [vmem:[%s1093_s4 + $0x98] sm:$0xff]  ;;  %v286_v56 = vld [vmem:[%s1093_s4 + $0x90] sm:$0xff]  ;;  %v133_v9 = vlaneseq }
  0x13   :  { %625 = vmatprep.subr.mxu0 %v716_v0  ;;  %555 = vmatprep.subr.mxu1 %v293_v35  ;;  %v959_v54 = vld [vmem:[%s1093_s4 + $0x120] sm:$0xff]  ;;  %v271_v55 = vld [vmem:[%s1093_s4 + $0x18] sm:$0xff]  ;;  %v270_v58 = vld [vmem:[%s1093_s4 + $0x10] sm:$0xff] }
  0x14   :  { %626 = vmatpush3.msra.mxu0 %v30_v10  ;;  %556 = vmatpush3.msra.mxu1 %v277_v37  ;;  %v971_v57 = vld [vmem:[%s1093_s4 + $0x118] sm:$0xff]  ;;  %v285_v59 = vld [vmem:[%s1093_s4 + $0x88] sm:$0xff]  ;;  %v983_v60 = vld [vmem:[%s1093_s4 + $0x110] sm:$0xff]  ;;  %v1013_v10 = vshrl.u32 %v133_v9, 7 }
  0x15   :  { %627 = vmatprep.subr.mxu0 %v716_v0  ;;  %557 = vmatprep.subr.mxu1 %v292_v38  ;;  %v269_v61 = vld [vmem:[%s1093_s4 + $0x8] sm:$0xff]  ;;  %v284_v62 = vld [vmem:[%s1093_s4 + $0x80] sm:$0xff]  ;;  %v131_v22 = vld [vmem:[%s1095_s0 + $0x10] sm:$0xff] }
  0x16   :  { %628 = vmatpush3.msra.mxu0 %v29_v11  ;;  %558 = vmatpush3.msra.mxu1 %v276_v40  ;;  %v998_v63 = vld [vmem:[%s1093_s4 + $0x108] sm:$0xff]  ;;  %v1007_v1 = vld [vmem:[%s1093_s4 + $0x100] sm:$0xff]  ;;  %v143_v19 = vsub.s32 1, %v1013_v10  ;;  %v155_v26 = vadd.s32 8, %v1013_v10  ;;  %v192_v34 = vand.u32 15, %v1013_v10  ;;  %v132_v40 = vld [vmem:[%s1095_s0 + $0x18] sm:$0xff] }
  0x17   :  { %629 = vmatprep.subr.mxu0 %v716_v0  ;;  %559 = vmatprep.subr.mxu1 %v291_v41  ;;  %v129_v20 = vld [vmem:[%s1095_s0] sm:$0xff]  ;;  %v130_v23 = vld [vmem:[%s1095_s0 + $0x8] sm:$0xff] }
  0x18   :  { %630 = vmatpush3.msra.mxu0 %v28_v12  ;;  %560 = vmatpush3.msra.mxu1 %v275_v43  ;;  %v117_v12 = vld [vmem:[%s1094_s2] sm:$0x3]  ;;  %v199_v41 = vand.u32 15, %v155_v26  ;;  %vm236_vm2 = vcmp.ne.s32.totalorder %v192_v34, 0 }
  0x19   :  { %631 = vmatprep.subr.mxu0 %v716_v0  ;;  %561 = vmatprep.subr.mxu1 %v290_v44 }
  0x1a   :  { %632 = vmatpush3.msra.mxu0 %v27_v13  ;;  %562 = vmatpush3.msra.mxu1 %v274_v46  ;;  %vm253_vm4 = vcmp.ne.s32.totalorder %v199_v41, 15 }
  0x1b   :  { %633 = vmatprep.subr.mxu0 %v716_v0  ;;  %563 = vmatprep.subr.mxu1 %v289_v47  ;;  %v156_v47 = vadd.s32 16, %v1013_v10 }
  0x1c   :  { %634 = vmatpush3.msra.mxu0 %v26_v14  ;;  %564 = vmatpush3.msra.mxu1 %v273_v49 }
  0x1d   :  { %635 = vmatprep.subr.mxu0 %v716_v0  ;;  %565 = vmatprep.subr.mxu1 %v288_v50 }
  0x1e   :  { %636 = vmatpush3.msra.mxu0 %v25_v15  ;;  %566 = vmatpush3.msra.mxu1 %v272_v52  ;;  %v135_v15 = vsub.s32 0, %v1013_v10 }
  0x1f   :  { %637 = vmatprep.subr.mxu0 %v716_v0  ;;  %567 = vmatprep.subr.mxu1 %v287_v53  ;;  %v268_v0 = vld [vmem:[%s1093_s4] sm:$0xff] }
  0x20   :  { %638 = vmatpush3.msra.mxu0 %v24_v16  ;;  %568 = vmatpush3.msra.mxu1 %v271_v55 }
  0x21   :  { %640 = vmatmul.mubr.f32.vlgmr.msra.gmra.mxu0 %v22_v17  ;;  %642 = vmatprep.subr.mxu0 %v816_v21 }
  0x22   :  { %643 = vmatpush3.msra.mxu0 %v816_v21  ;;  %569 = vmatprep.subr.mxu1 %v286_v56 }
  0x23   :  { %644 = vmatprep.subr.mxu0 %v829_v24  ;;  %570 = vmatpush3.msra.mxu1 %v270_v58 }
  0x24   :  { %645 = vmatpush3.msra.mxu0 %v829_v24  ;;  %571 = vmatprep.subr.mxu1 %v285_v59 }
  0x25   :  { %646 = vmatprep.subr.mxu0 %v842_v27  ;;  %572 = vmatpush3.msra.mxu1 %v269_v61 }
  0x26   :  { %647 = vmatpush3.msra.mxu0 %v842_v27  ;;  %573 = vmatprep.subr.mxu1 %v284_v62 }
  0x27   :  { %648 = vmatprep.subr.mxu0 %v855_v30  ;;  %574 = vmatpush3.msra.mxu1 %v268_v0  ;;  %v206_v0 = vand.u32 15, %v156_v47 }
  0x28   :  { %649 = vmatpush3.msra.mxu0 %v855_v30  ;;  %680 = vmatprep.subr.mxu1 %v816_v21 }
  0x29   :  { %650 = vmatprep.subr.mxu0 %v868_v33  ;;  %vm238_vm5 = vcmp.ne.s32.totalorder %v206_v0, 0 }
  0x2a   :  { %651 = vmatpush3.msra.mxu0 %v868_v33 }
  0x2b   :  { %652 = vmatprep.subr.mxu0 %v881_v36 }
  0x2c   :  { %653 = vmatpush3.msra.mxu0 %v881_v36 }
  0x2d   :  { %654 = vmatprep.subr.mxu0 %v894_v39 }
  0x2e   :  { %655 = vmatpush3.msra.mxu0 %v894_v39 }
  0x2f   :  { %656 = vmatprep.subr.mxu0 %v907_v42 }
  0x30   :  { %657 = vmatpush3.msra.mxu0 %v907_v42 }
  0x31   :  { %658 = vmatprep.subr.mxu0 %v920_v45 }
  0x32   :  { %659 = vmatpush3.msra.mxu0 %v920_v45 }
  0x33   :  { %660 = vmatprep.subr.mxu0 %v933_v48 }
  0x34   :  { %661 = vmatpush3.msra.mxu0 %v933_v48 }
  0x35   :  { %662 = vmatprep.subr.mxu0 %v946_v51 }
  0x36   :  { %663 = vmatpush3.msra.mxu0 %v946_v51 }
  0x37   :  { %664 = vmatprep.subr.mxu0 %v959_v54 }
  0x38   :  { %665 = vmatpush3.msra.mxu0 %v959_v54 }
  0x39   :  { %666 = vmatprep.subr.mxu0 %v971_v57 }
  0x3a   :  { %667 = vmatpush3.msra.mxu0 %v971_v57 }
  0x3b   :  { %668 = vmatprep.subr.mxu0 %v983_v60 }
  0x3c   :  { %669 = vmatpush3.msra.mxu0 %v983_v60 }
  0x3d   :  { %670 = vmatprep.subr.mxu0 %v998_v63 }
  0x3e   :  { %671 = vmatpush3.msra.mxu0 %v998_v63 }
  0x3f   :  { %672 = vmatprep.subr.mxu0 %v1007_v1 }
  0x40   :  { %673 = vmatpush3.msra.mxu0 %v1007_v1 }
  0xe1   :  { %v106_v2 = vpop.f32.mrf.mxu0 }
  0xe2   :  { %v111_v3 = vmul.f32 0.001953125, %v106_v2 }
  0xe3   :  { %v641_v4 = vpop.f32.mrf.mxu0 }
  0xe4   :  { %v112_v5 = vmul.f32 %v111_v3, %v111_v3 }
  0xe6   :  { %v114_v6 = vrot.slane %v112_v5, 7 }
  0xe8   :  { %v116_v7 = vsub.f32 %v111_v3, %v114_v6 }
  0xea   :  { %v118_v8 = vadd.f32 1e-05, %v116_v7 }
  0xec   :  { %714 = vrsqrt.f32 %v118_v8 }
  0xf9   :  { %v715_v11 = vpop.eup %714 }
  0xfa   :  { %v121_v13 = vrot.slane %v715_v11, 1 }
  0xfc   :  { %v123_v14 = vmul.f32 %v121_v13, %v117_v12 }
  0xfe   :  { %v124_v16 = vmul.f32 %v123_v14, %v111_v3  ;;  %v136_v18 = vrot.slane %v123_v14, %v135_v15 }
 0x100   :  { %v126_v17 = vrot.slane %v124_v16, 7  ;;  %v137_v29 = vmul.f32 %v136_v18, %v129_v20  ;;  %v139_v31 = vmul.f32 %v136_v18, %v131_v22  ;;  %v138_v32 = vmul.f32 %v136_v18, %v130_v23 }
 0x101   :  { %v140_v49 = vmul.f32 %v136_v18, %v132_v40 }
 0x102   :  { %v128_v25 = vsub.f32 %v117_v12, %v126_v17 }
 0x104   :  { %v144_v28 = vrot.slane %v128_v25, %v143_v19 }
 0x106   :  { %v145_v35 = vadd.f32 %v144_v28, %v137_v29  ;;  %v146_v37 = vadd.f32 %v144_v28, %v138_v32  ;;  %v147_v38 = vadd.f32 %v144_v28, %v139_v31  ;;  %v148_v56 = vadd.f32 %v144_v28, %v140_v49 }
 0x108   :  { %v149_v43 = vmax.f32 %v145_v35, 0.0  ;;  %v150_v44 = vmax.f32 %v146_v37, 0.0  ;;  %v151_v46 = vmax.f32 %v147_v38, 0.0  ;;  %v152_v4 = vmax.f32 %v148_v56, 0.0 }
 0x10a   :  { %380 = vmatprep.mubr.f32.mxu1 %v149_v43  ;;  %v163_v50 = vrot.slane %v149_v43, 7  ;;  %v176_v52 = vrot.slane %v149_v43, 1  ;;  %v177_v53 = vrot.slane %v150_v44, 1  ;;  %v179_v55 = vrot.slane %v151_v46, 1 }
 0x10b   :  { %v164_v62 = vrot.slane %v150_v44, 7  ;;  %v166_v3 = vrot.slane %v151_v46, 7  ;;  %v168_v5 = vrot.slane %v152_v4, 7 }
 0x10c   :  { %v174_v58 = vsel %vm162_vm1, 0.0, %v163_v50  ;;  %v178_v59 = vsel %vm175_vm3, %v176_v52, %v177_v53  ;;  %v180_v61 = vsel %vm175_vm3, %v177_v53, %v179_v55 }
 0x10d   :  { %522 = vmatmul.mubr.msk.f32.vlgmr.msra.gmra.mxu1 %vm236_vm2, %v174_v58  ;;  %674 = vmatprep.mubr.f32.mxu0 %v178_v59  ;;  %v165_v2 = vsel %vm162_vm1, %v163_v50, %v164_v62 }
 0x10e   :  { %696 = vmatpush3.msra.mxu1 %v816_v21  ;;  %385 = vmatprep.mubr.f32.mxu1 %v150_v44  ;;  %v167_v21 = vsel %vm162_vm1, %v164_v62, %v166_v3 }
 0x10f   :  { %681 = vmatprep.subr.mxu1 %v829_v24  ;;  %675 = vmatmul.mubr.msk.f32.vlgmr.msra.gmra.mxu0 %vm253_vm4, %v180_v61 }
 0x110   :  { %697 = vmatpush3.msra.mxu1 %v829_v24  ;;  %v181_v24 = vrot.slane %v152_v4, 1 }
 0x111   :  { %682 = vmatprep.subr.mxu1 %v842_v27  ;;  %386 = vmatmul.mubr.f32.gmra.mxu1 %v165_v2 }
 0x112   :  { %698 = vmatpush3.msra.mxu1 %v842_v27  ;;  %390 = vmatprep.mubr.f32.mxu1 %v151_v46  ;;  %v169_v27 = vsel %vm162_vm1, %v166_v3, %v168_v5 }
 0x113   :  { %683 = vmatprep.subr.mxu1 %v855_v30 }
 0x114   :  { %699 = vmatpush3.msra.mxu1 %v855_v30  ;;  %v182_v30 = vsel %vm175_vm3, %v179_v55, %v181_v24 }
 0x115   :  { %684 = vmatprep.subr.mxu1 %v868_v33  ;;  %523 = vmatmul.mubr.msk.f32.gmra.mxu1 %vm238_vm5, %v167_v21 }
 0x116   :  { %700 = vmatpush3.msra.mxu1 %v868_v33  ;;  %395 = vmatprep.mubr.f32.mxu1 %v152_v4  ;;  %v157_v33 = vadd.s32 24, %v1013_v10 }
 0x117   :  { %685 = vmatprep.subr.mxu1 %v881_v36 }
 0x118   :  { %701 = vmatpush3.msra.mxu1 %v881_v36  ;;  %v213_v36 = vand.u32 15, %v157_v33 }
 0x119   :  { %686 = vmatprep.subr.mxu1 %v894_v39  ;;  %396 = vmatmul.mubr.f32.gmra.mxu1 %v169_v27 }
 0x11a   :  { %702 = vmatpush3.msra.mxu1 %v894_v39  ;;  %677 = vmatprep.mubr.f32.mxu1 %v182_v30  ;;  %vm255_vm6 = vcmp.ne.s32.totalorder %v213_v36, 15  ;;  %v187_v39 = vsel %vm175_vm3, %v181_v24, 0.0 }
 0x11b   :  { %687 = vmatprep.subr.mxu1 %v907_v42 }
 0x11c   :  { %703 = vmatpush3.msra.mxu1 %v907_v42 }
 0x11d   :  { %688 = vmatprep.subr.mxu1 %v920_v45 }
 0x11e   :  { %704 = vmatpush3.msra.mxu1 %v920_v45 }
 0x11f   :  { %689 = vmatprep.subr.mxu1 %v933_v48 }
 0x120   :  { %705 = vmatpush3.msra.mxu1 %v933_v48 }
 0x121   :  { %690 = vmatprep.subr.mxu1 %v946_v51 }
 0x122   :  { %706 = vmatpush3.msra.mxu1 %v946_v51 }
 0x123   :  { %691 = vmatprep.subr.mxu1 %v959_v54 }
 0x124   :  { %707 = vmatpush3.msra.mxu1 %v959_v54 }
 0x125   :  { %692 = vmatprep.subr.mxu1 %v971_v57 }
 0x126   :  { %708 = vmatpush3.msra.mxu1 %v971_v57 }
 0x127   :  { %693 = vmatprep.subr.mxu1 %v983_v60 }
 0x128   :  { %709 = vmatpush3.msra.mxu1 %v983_v60 }
 0x129   :  { %694 = vmatprep.subr.mxu1 %v998_v63 }
 0x12a   :  { %710 = vmatpush3.msra.mxu1 %v998_v63 }
 0x12b   :  { %695 = vmatprep.subr.mxu1 %v1007_v1 }
 0x12c   :  { %711 = vmatpush3.msra.mxu1 %v1007_v1 }
 0x12d   :  { %678 = vmatmul.mubr.msk.f32.vlgmr.msra.gmra.mxu1 %vm255_vm6, %v187_v39 }
 0x1cd   :  { %v575_v42 = vpop.f32.mrf.mxu1 }
 0x1cf   :  { %v676_v45 = vpop.f32.mrf.mxu0  ;;  %v576_v48 = vpop.f32.mrf.mxu1 }
 0x1d0   :  { %v577_v51 = vadd.f32 %v576_v48, %v575_v42 }
 0x1d1   :  { %v467_v54 = vpop.f32.mrf.mxu0  ;;  %v578_v57 = vpop.f32.mrf.mxu1 }
 0x1d2   :  { %v468_v6 = vadd.f32 %v577_v51, %v467_v54 }
 0x1d3   :  { %v579_v60 = vpop.f32.mrf.mxu1 }
 0x1d4   :  { %486 = vst [vmem:[%s1096_s5] sm:$0xff] %v468_v6  ;;  %v580_v63 = vadd.f32 %v579_v60, %v578_v57  ;;  %v499_v17 = vmul.f32 %v468_v6, %v468_v6 }
 0x1d5   :  { %v581_v1 = vpop.f32.mrf.mxu1 }
 0x1d6   :  { %v473_v7 = vadd.f32 %v676_v45, %v580_v63 }
 0x1d7   :  { %v582_v8 = vpop.f32.mrf.mxu1 }
 0x1d8   :  { %487 = vst [vmem:[%s1096_s5 + $0x8] sm:$0xff] %v473_v7  ;;  %v500_v13 = vmul.f32 %v473_v7, %v473_v7  ;;  %v583_v14 = vadd.f32 %v582_v8, %v581_v1  ;;  %v490_v19 = vadd.f32 %v473_v7, %v468_v6 }
 0x1d9   :  { %v584_v9 = vpop.f32.mrf.mxu1 }
 0x1da   :  { %v503_v23 = vadd.f32 %v500_v13, %v499_v17 }
 0x1db   :  { %v585_v10 = vpop.f32.mrf.mxu1 }
 0x1dc   :  { %v586_v11 = vadd.f32 %v585_v10, %v584_v9 }
 0x1ed   :  { %v679_v12 = vpop.f32.mrf.mxu1 }
 0x1ee   :  { %v483_v15 = vadd.f32 %v679_v12, %v586_v11 }
 0x1ef   :  { %v477_v16 = vpop.f32.mrf.mxu1 }
 0x1f0   :  { %489 = vst [vmem:[%s1096_s5 + $0x18] sm:$0xff] %v483_v15  ;;  %v478_v18 = vadd.f32 %v583_v14, %v477_v16  ;;  %v502_v25 = vmul.f32 %v483_v15, %v483_v15 }
 0x1f2   :  { %488 = vst [vmem:[%s1096_s5 + $0x10] sm:$0xff] %v478_v18  ;;  %v491_v20 = vadd.f32 %v490_v19, %v478_v18  ;;  %v501_v22 = vmul.f32 %v478_v18, %v478_v18 }
 0x1f4   :  { %v492_v26 = vadd.f32 %v491_v20, %v483_v15  ;;  %v504_v28 = vadd.f32 %v503_v23, %v501_v22 }
 0x1f6   :  { %v493_v29 = vrot.slane %v492_v26, 4  ;;  %v505_v31 = vadd.f32 %v504_v28, %v502_v25 }
 0x1f8   :  { %v494_v32 = vadd.f32 %v493_v29, %v492_v26  ;;  %v506_v34 = vrot.slane %v505_v31, 4 }
 0x1fa   :  { %v495_v35 = vrot.slane %v494_v32, 2  ;;  %v507_v37 = vadd.f32 %v506_v34, %v505_v31 }
 0x1fc   :  { %v496_v38 = vadd.f32 %v495_v35, %v494_v32  ;;  %v508_v40 = vrot.slane %v507_v37, 2 }
 0x1fe   :  { %v497_v41 = vrot.slane %v496_v38, 1  ;;  %v509_v43 = vadd.f32 %v508_v40, %v507_v37 }
 0x200   :  { %v510_v44 = vrot.slane %v509_v43, 1  ;;  %v498_v46 = vadd.f32 %v497_v41, %v496_v38 }
 0x202   :  { %v511_v47 = vadd.f32 %v510_v44, %v509_v43 }
 0x204   :  { %v512_v49 = vsel %vm162_vm1, %v498_v46, %v511_v47 }
 0x205   :  { %513 = vst [vmem:[%s1097_s6] sm:$0x3] %v512_v49 }

// kernel: basic_block_forward.5
= control target key start
LH: loop header
LB: loop body
LE: loop exit
PB: predicated region body
PF: predicated region fallthrough
CT: control target
= control target key end

     0   :  { %v389_v0 = vmov 0.0   ;;  %vm390_vm0 = vmmov 0   ;;  %v227_v33 = vlaneseq  ;;  %s561_s6 = inlined_call_operand.vmem [shape: f32[128,128], index: 6, kind: input, shape index: {}]   ;;  %s562_s2 = inlined_call_operand.vmem [shape: f32[1,2,128], index: 2, kind: input, shape index: {}]   ;;  %s563_s3 = inlined_call_operand.vmem [shape: f32[1,2,128], index: 3, kind: input, shape index: {}]   ;;  %s564_s4 = inlined_call_operand.vmem [shape: f32[2,128], index: 4, kind: input, shape index: {}]   ;;  %s565_s5 = inlined_call_operand.vmem [shape: f32[2,128], index: 5, kind: input, shape index: {}]   ;;  %s566_s0 = inlined_call_operand.vmem [shape: f32[32,128], index: 0, kind: input, shape index: {}]   ;;  %s567_s1 = inlined_call_operand.vmem [shape: f32[32,128], index: 1, kind: input, shape index: {}]   ;;  %s568_s7 = inlined_call_operand.vmem [shape: f32[32,128], index: 7, kind: output, shape index: {}]  }
   0x1   :  { %313 = vmatprep.subr.mxu0 %v389_v0  ;;  %348 = vmatprep.subr.mxu1 %v389_v0  ;;  %v43_v1 = vld [vmem:[%s561_s6 + $0x78] sm:$0xff]  ;;  %v42_v2 = vld [vmem:[%s561_s6 + $0x70] sm:$0xff]  ;;  %v41_v3 = vld [vmem:[%s561_s6 + $0x68] sm:$0xff] }
   0x2   :  { %314 = vmatpush3.msra.mxu0 %v43_v1  ;;  %349 = vmatpush3.msra.mxu1 %v43_v1  ;;  %v40_v4 = vld [vmem:[%s561_s6 + $0x60] sm:$0xff]  ;;  %v39_v5 = vld [vmem:[%s561_s6 + $0x58] sm:$0xff]  ;;  %v38_v6 = vld [vmem:[%s561_s6 + $0x50] sm:$0xff]  ;;  %v228_v34 = vshrl.u32 %v227_v33, 7 }
   0x3   :  { %315 = vmatprep.subr.mxu0 %v389_v0  ;;  %350 = vmatprep.subr.mxu1 %v389_v0  ;;  %v37_v7 = vld [vmem:[%s561_s6 + $0x48] sm:$0xff]  ;;  %v36_v8 = vld [vmem:[%s561_s6 + $0x40] sm:$0xff]  ;;  %v35_v9 = vld [vmem:[%s561_s6 + $0x38] sm:$0xff] }
   0x4   :  { %316 = vmatpush3.msra.mxu0 %v42_v2  ;;  %351 = vmatpush3.msra.mxu1 %v42_v2  ;;  %v34_v10 = vld [vmem:[%s561_s6 + $0x30] sm:$0xff]  ;;  %v33_v11 = vld [vmem:[%s561_s6 + $0x28] sm:$0xff]  ;;  %v32_v12 = vld [vmem:[%s561_s6 + $0x20] sm:$0xff]  ;;  %v229_v40 = vsub.s32 0, %v228_v34  ;;  %v237_v50 = vsub.s32 1, %v228_v34 }
   0x5   :  { %317 = vmatprep.subr.mxu0 %v389_v0  ;;  %352 = vmatprep.subr.mxu1 %v389_v0  ;;  %v31_v13 = vld [vmem:[%s561_s6 + $0x18] sm:$0xff]  ;;  %v30_v14 = vld [vmem:[%s561_s6 + $0x10] sm:$0xff]  ;;  %v29_v15 = vld [vmem:[%s561_s6 + $0x8] sm:$0xff] }
   0x6   :  { %318 = vmatpush3.msra.mxu0 %v41_v3  ;;  %353 = vmatpush3.msra.mxu1 %v41_v3  ;;  %v28_v16 = vld [vmem:[%s561_s6] sm:$0xff]  ;;  %v224_v49 = vld [vmem:[%s566_s0 + $0x8] sm:$0xff]  ;;  %v225_v52 = vld [vmem:[%s566_s0 + $0x10] sm:$0xff] }
   0x7   :  { %319 = vmatprep.subr.mxu0 %v389_v0  ;;  %354 = vmatprep.subr.mxu1 %v389_v0  ;;  %v26_v17 = vld [vmem:[%s562_s2] sm:$0x3]  ;;  %v226_v53 = vld [vmem:[%s566_s0 + $0x18] sm:$0xff]  ;;  %v244_v57 = vld [vmem:[%s567_s1 + $0x8] sm:$0xff] }
   0x8   :  { %320 = vmatpush3.msra.mxu0 %v40_v4  ;;  %355 = vmatpush3.msra.mxu1 %v40_v4  ;;  %v133_v18 = vld [vmem:[%s563_s3] sm:$0x3]  ;;  %v245_v58 = vld [vmem:[%s567_s1 + $0x10] sm:$0xff]  ;;  %v246_v59 = vld [vmem:[%s567_s1 + $0x18] sm:$0xff] }
   0x9   :  { %321 = vmatprep.subr.mxu0 %v389_v0  ;;  %356 = vmatprep.subr.mxu1 %v389_v0  ;;  %v121_v36 = vld [vmem:[%s564_s4] sm:$0x3] }
   0xa   :  { %322 = vmatpush3.msra.mxu0 %v39_v5  ;;  %357 = vmatpush3.msra.mxu1 %v39_v5  ;;  %v211_v39 = vld [vmem:[%s565_s5] sm:$0x3] }
   0xb   :  { %323 = vmatprep.subr.mxu0 %v389_v0  ;;  %358 = vmatprep.subr.mxu1 %v389_v0  ;;  %v223_v48 = vld [vmem:[%s566_s0] sm:$0xff] }
   0xc   :  { %324 = vmatpush3.msra.mxu0 %v38_v6  ;;  %359 = vmatpush3.msra.mxu1 %v38_v6  ;;  %v243_v55 = vld [vmem:[%s567_s1] sm:$0xff] }
   0xd   :  { %325 = vmatprep.subr.mxu0 %v389_v0  ;;  %360 = vmatprep.subr.mxu1 %v389_v0 }
   0xe   :  { %326 = vmatpush3.msra.mxu0 %v37_v7  ;;  %361 = vmatpush3.msra.mxu1 %v37_v7 }
   0xf   :  { %327 = vmatprep.subr.mxu0 %v389_v0  ;;  %362 = vmatprep.subr.mxu1 %v389_v0 }
  0x10   :  { %328 = vmatpush3.msra.mxu0 %v36_v8  ;;  %363 = vmatpush3.msra.mxu1 %v36_v8 }
  0x11   :  { %329 = vmatprep.subr.mxu0 %v389_v0  ;;  %364 = vmatprep.subr.mxu1 %v389_v0 }
  0x12   :  { %330 = vmatpush3.msra.mxu0 %v35_v9  ;;  %365 = vmatpush3.msra.mxu1 %v35_v9 }
  0x13   :  { %331 = vmatprep.subr.mxu0 %v389_v0  ;;  %366 = vmatprep.subr.mxu1 %v389_v0 }
  0x14   :  { %332 = vmatpush3.msra.mxu0 %v34_v10  ;;  %367 = vmatpush3.msra.mxu1 %v34_v10 }
  0x15   :  { %333 = vmatprep.subr.mxu0 %v389_v0  ;;  %368 = vmatprep.subr.mxu1 %v389_v0 }
  0x16   :  { %334 = vmatpush3.msra.mxu0 %v33_v11  ;;  %369 = vmatpush3.msra.mxu1 %v33_v11 }
  0x17   :  { %335 = vmatprep.subr.mxu0 %v389_v0  ;;  %370 = vmatprep.subr.mxu1 %v389_v0 }
  0x18   :  { %336 = vmatpush3.msra.mxu0 %v32_v12  ;;  %371 = vmatpush3.msra.mxu1 %v32_v12 }
  0x19   :  { %337 = vmatprep.subr.mxu0 %v389_v0  ;;  %372 = vmatprep.subr.mxu1 %v389_v0 }
  0x1a   :  { %338 = vmatpush3.msra.mxu0 %v31_v13  ;;  %373 = vmatpush3.msra.mxu1 %v31_v13 }
  0x1b   :  { %339 = vmatprep.subr.mxu0 %v389_v0  ;;  %374 = vmatprep.subr.mxu1 %v389_v0 }
  0x1c   :  { %340 = vmatpush3.msra.mxu0 %v30_v14  ;;  %375 = vmatpush3.msra.mxu1 %v30_v14 }
  0x1d   :  { %341 = vmatprep.subr.mxu0 %v389_v0  ;;  %376 = vmatprep.subr.mxu1 %v389_v0 }
  0x1e   :  { %342 = vmatpush3.msra.mxu0 %v29_v15  ;;  %377 = vmatpush3.msra.mxu1 %v29_v15 }
  0x1f   :  { %343 = vmatprep.subr.mxu0 %v389_v0  ;;  %378 = vmatprep.subr.mxu1 %v389_v0 }
  0x20   :  { %344 = vmatpush3.msra.mxu0 %v28_v16  ;;  %345 = vmatprep.mubr.msk.f32.mxu0 %vm390_vm0, %v389_v0 }
  0x21   :  { %379 = vmatpush3.msra.mxu1 %v28_v16  ;;  %380 = vmatprep.mubr.msk.f32.mxu1 %vm390_vm0, %v389_v0 }
  0x22   :  { %346 = vmatmul.mubr.f32.vlgmr.msra.gmra.mxu0 %v26_v17  ;;  %381 = vmatmul.mubr.f32.vlgmr.msra.gmra.mxu1 %v133_v18 }
  0xe2   :  { %v110_v19 = vpop.f32.mrf.mxu0  ;;  %v201_v20 = vpop.f32.mrf.mxu1 }
  0xe3   :  { %v115_v21 = vmul.f32 0.001953125, %v110_v19  ;;  %v205_v22 = vmul.f32 0.001953125, %v201_v20 }
  0xe4   :  { %v347_v23 = vpop.f32.mrf.mxu0  ;;  %v382_v24 = vpop.f32.mrf.mxu1 }
  0xe5   :  { %v116_v25 = vmul.f32 %v115_v21, %v115_v21  ;;  %v206_v26 = vmul.f32 %v205_v22, %v205_v22 }
  0xe7   :  { %v118_v27 = vrot.slane %v116_v25, 7  ;;  %v208_v28 = vrot.slane %v206_v26, 7 }
  0xe9   :  { %v120_v29 = vsub.f32 %v115_v21, %v118_v27  ;;  %v210_v30 = vsub.f32 %v205_v22, %v208_v28 }
  0xeb   :  { %v122_v31 = vadd.f32 1e-05, %v120_v29  ;;  %v212_v32 = vadd.f32 1e-05, %v210_v30 }
  0xed   :  { %385 = vrsqrt.f32 %v122_v31 }
  0xee   :  { %387 = vrsqrt.f32 %v212_v32 }
  0xfa   :  { %v386_v35 = vpop.eup %385 }
  0xfb   :  { %v388_v37 = vpop.eup %387  ;;  %v125_v38 = vrot.slane %v386_v35, 1 }
  0xfc   :  { %v215_v41 = vrot.slane %v388_v37, 1 }
  0xfd   :  { %v127_v42 = vmul.f32 %v125_v38, %v121_v36 }
  0xfe   :  { %v217_v43 = vmul.f32 %v215_v41, %v211_v39 }
  0xff   :  { %v128_v44 = vmul.f32 %v127_v42, %v115_v21  ;;  %v230_v45 = vrot.slane %v127_v42, %v229_v40 }
 0x100   :  { %v218_v46 = vmul.f32 %v217_v43, %v205_v22  ;;  %v250_v51 = vrot.slane %v217_v43, %v229_v40 }
 0x101   :  { %v130_v47 = vrot.slane %v128_v44, 7  ;;  %v231_v60 = vmul.f32 %v230_v45, %v223_v48  ;;  %v232_v61 = vmul.f32 %v230_v45, %v224_v49  ;;  %v233_v63 = vmul.f32 %v230_v45, %v225_v52 }
 0x102   :  { %v220_v54 = vrot.slane %v218_v46, 7  ;;  %v234_v0 = vmul.f32 %v230_v45, %v226_v53  ;;  %v251_v2 = vmul.f32 %v250_v51, %v243_v55  ;;  %v252_v3 = vmul.f32 %v250_v51, %v244_v57 }
 0x103   :  { %v132_v56 = vsub.f32 %v121_v36, %v130_v47  ;;  %v253_v4 = vmul.f32 %v250_v51, %v245_v58  ;;  %v254_v5 = vmul.f32 %v250_v51, %v246_v59 }
 0x104   :  { %v222_v62 = vsub.f32 %v211_v39, %v220_v54 }
 0x105   :  { %v238_v1 = vrot.slane %v132_v56, %v237_v50 }
 0x106   :  { %v258_v6 = vrot.slane %v222_v62, %v237_v50 }
 0x107   :  { %v239_v7 = vadd.f32 %v238_v1, %v231_v60  ;;  %v240_v8 = vadd.f32 %v238_v1, %v232_v61  ;;  %v241_v9 = vadd.f32 %v238_v1, %v233_v63  ;;  %v242_v10 = vadd.f32 %v238_v1, %v234_v0 }
 0x108   :  { %v259_v11 = vadd.f32 %v258_v6, %v251_v2  ;;  %v260_v12 = vadd.f32 %v258_v6, %v252_v3  ;;  %v261_v13 = vadd.f32 %v258_v6, %v253_v4  ;;  %v262_v14 = vadd.f32 %v258_v6, %v254_v5 }
 0x10a   :  { %v263_v15 = vadd.f32 %v259_v11, %v239_v7  ;;  %v264_v16 = vadd.f32 %v260_v12, %v240_v8  ;;  %v265_v17 = vadd.f32 %v261_v13, %v241_v9  ;;  %v266_v18 = vadd.f32 %v262_v14, %v242_v10 }
 0x10c   :  { %v267_v19 = vmax.f32 %v263_v15, 0.0  ;;  %v268_v20 = vmax.f32 %v264_v16, 0.0  ;;  %v269_v21 = vmax.f32 %v265_v17, 0.0  ;;  %v270_v22 = vmax.f32 %v266_v18, 0.0 }
 0x10e   :  { %271 = vst [vmem:[%s568_s7] sm:$0xff] %v267_v19  ;;  %272 = vst [vmem:[%s568_s7 + $0x8] sm:$0xff] %v268_v20 }
 0x10f   :  { %273 = vst [vmem:[%s568_s7 + $0x10] sm:$0xff] %v269_v21  ;;  %274 = vst [vmem:[%s568_s7 + $0x18] sm:$0xff] %v270_v22 }

</bundles_post_ra>
